<compile_context>
chip_gen: v7x
topology: tpu7x:2x2x1
jax: 0.10.0
libtpu: 0.0.40
codegen_flags: <defaults>
</compile_context>

<pallas_src>
import math
import functools

import numpy as np
import jax
import jax.numpy as jnp
from jax import lax
from jax.experimental import pallas as pl
from jax.experimental.pallas import tpu as pltpu


# ----------------------------- in-kernel helpers -----------------------------

def _erf(x):
    # Abramowitz & Stegun 7.1.26 (max abs err ~1.5e-7).  Kept instead of
    # lax.erf because its Mosaic lowering is not guaranteed on all jax
    # versions.  Both the exp() and the reciprocal run on the EUP, off the
    # VALU critical path.
    a1, a2, a3, a4, a5 = (0.254829592, -0.284496736, 1.421413741,
                          -1.453152027, 1.061405429)
    p = 0.3275911
    s = jnp.where(x >= 0.0, 1.0, -1.0)
    z = jnp.abs(x)
    t = pl.reciprocal(1.0 + p * z, approx=True)          # EUP vrcp
    poly = ((((a5 * t + a4) * t + a3) * t + a2) * t + a1) * t
    return s * (1.0 - poly * jnp.exp(-z * z))


def _gelu_exact(x):
    # Matches nn.GELU() default (erf-based), up to the erf approximation above.
    return 0.5 * x * (1.0 + _erf(x * (1.0 / math.sqrt(2.0))))


def _layernorm_pe(x, gamma, beta, eps=1e-5):
    # nn.LayerNorm([P, E]): normalize jointly over the whole (P, E) slab.
    # Two single-axis means (lane axis then sublane axis) == the joint mean
    # because the group sizes are uniform; both reductions lower cleanly.
    mu = jnp.mean(jnp.mean(x, axis=1, keepdims=True), axis=0, keepdims=True)
    d = x - mu
    var = jnp.mean(jnp.mean(d * d, axis=1, keepdims=True), axis=0, keepdims=True)
    inv = lax.rsqrt(var + eps)
    return d * inv * gamma + beta


# --------------------------------- kernel ------------------------------------

def transformer_kernel(x_ref, g1_ref, b1_ref, wqkv_ref, g2_ref, b2_ref,
                       w1_ref, mb1_ref, w2_ref, mb2_ref, o_ref,
                       *, heads, head_dim):
    f32 = jnp.float32
    bf16 = jnp.bfloat16
    H, Dh = heads, head_dim

    x = x_ref[0]                                           # (P, E) f32
    P, E = x.shape

    # ---- norm1 + fused QKV projection (linear1, no bias) ----
    xn = _layernorm_pe(x, g1_ref[...], b1_ref[...])
    # Transposed projection: W_qkv (3E, E) [native PyTorch layout, bf16]
    # contracted with xn (P, E) over E -> (3E, P).  One bf16 MXU push; the
    # (qkv, head, dh) structure now lives in the sublane axis, so the per-head
    # slices below are aligned 8-row vreg groups (no lane slicing / concat of
    # narrow lane chunks on the input side).
    qkvT = lax.dot_general(wqkv_ref[...], xn.astype(bf16),
                           (((1,), (1,)), ((), ())),
                           preferred_element_type=f32)     # (3E, P)

    def head_major(base):
        # (H, P, Dh): vreg-aligned row-group slices + tiny 2-D transposes.
        return jnp.stack(
            [qkvT[base + h * Dh:base + (h + 1) * Dh, :].T for h in range(H)])

    q = head_major(0)                                      # (H, P, Dh)
    k = head_major(E)
    v = head_major(2 * E)

    # ---- multi-head attention, batched over heads in one dot_general pair ----
    # Softmax over dim -2 (the *query* axis), exactly as in the PyTorch code.
    inv_scale = 1.0 / math.sqrt(float(Dh))
    s = lax.dot_general(q.astype(bf16), k.astype(bf16),
                        (((2,), (2,)), ((0,), (0,))),
                        preferred_element_type=f32) * inv_scale   # (H, Pq, Pk)
    s = s - jnp.max(s, axis=1, keepdims=True)
    e = jnp.exp(s)
    p = e * pl.reciprocal(jnp.sum(e, axis=1, keepdims=True), approx=True)
    o = lax.dot_general(p.astype(bf16), v.astype(bf16),
                        (((2,), (1,)), ((0,), (0,))),
                        preferred_element_type=f32)               # (H, P, Dh)
    # Merge heads back to (P, E).  NOTE: still a lane-axis concat of H pieces;
    # at production sizes keep Dh >= 128 (or fold the merge into the next
    # matmul) so this becomes full-vreg traffic.
    attn = jnp.concatenate([o[h] for h in range(H)], axis=-1)     # (P, E)
    res1 = x + attn                                               # residual 1

    # ---- norm2 + MLP: Linear(E,3E)+b -> GELU -> Linear(3E,E)+b -> GELU ----
    yn = _layernorm_pe(res1, g2_ref[...], b2_ref[...])
    h1 = lax.dot_general(yn.astype(bf16), w1_ref[...],            # (P, 3E)
                         (((1,), (0,)), ((), ())),
                         preferred_element_type=f32) + mb1_ref[...]
    h1 = _gelu_exact(h1)
    h2 = lax.dot_general(h1.astype(bf16), w2_ref[...],            # (P, E)
                         (((1,), (0,)), ((), ())),
                         preferred_element_type=f32) + mb2_ref[...]
    h2 = _gelu_exact(h2)

    o_ref[...] = (h2 + res1)[None, :, :].astype(o_ref.dtype)      # residual 2


# --------------------------------- wrapper -----------------------------------

def transformer_forward(x, params, *, heads):
    B, P, E = x.shape
    head_dim = E // heads
    g1, b1, wqkv, g2, b2, w1, bias1, w2, bias2 = params

    # One-time HBM-side prep (plain XLA ops, outside the kernel):
    #  * weights cast to bf16 (MXU-native rate, half the DMA/VMEM footprint);
    #    accumulation stays f32 via preferred_element_type inside the kernel.
    #  * MLP weights pre-transposed ONCE so the kernel uses plain ((1,),(0,))
    #    contractions (no per-grid-step transpose of a constant operand).
    #  * W_qkv stays in native (3E, E) layout: the kernel computes the
    #    transposed projection, for which that layout is already the plain LHS.
    wqkv_bf = wqkv.astype(jnp.bfloat16)          # (3E, E)
    w1t_bf = w1.T.astype(jnp.bfloat16)           # (E, 3E)
    w2t_bf = w2.T.astype(jnp.bfloat16)           # (3E, E)
    bias1_2d = bias1.reshape(1, 3 * E)
    bias2_2d = bias2.reshape(1, E)

    kernel = functools.partial(transformer_kernel, heads=heads, head_dim=head_dim)

    # NOTE: at production ViT sizes (E ~ 768, 3E ~ 2304) add grid axes tiling
    # the 3E dimension of W_qkv/W1 ("parallel") and of W2 ("arbitrary"
    # reduction with a VMEM accumulator) so only an (E, tn) weight slab is
    # resident per step; pick tn per generation (v7x: 64 MiB physical VMEM and
    # 256-aligned MXU tiles on v6e/v7x, 128-aligned on v5e), and pad P/E so
    # the last dim is a multiple of 128 for lane-dense stores.
    def build(single_buffer_consts):
        def const_spec(shape):
            # Constant-index operands never change across grid steps, so one
            # VMEM buffer is enough (no pipelining needed) -> halves their
            # resident footprint.
            if single_buffer_consts:
                return pl.BlockSpec(shape, lambda b: (0,) * len(shape),
                                    pipeline_mode=pl.Buffered(1))
            return pl.BlockSpec(shape, lambda b: (0,) * len(shape))

        return pl.pallas_call(
            kernel,
            out_shape=jax.ShapeDtypeStruct((B, P, E), x.dtype),
            grid=(B,),                      # >= 2: pipelining + v7x megacore
            in_specs=[
                pl.BlockSpec((1, P, E), lambda b: (b, 0, 0)),    # x batch tile
                const_spec((P, E)), const_spec((P, E)),          # norm1 gamma/beta
                const_spec((3 * E, E)),                          # W_qkv (bf16, native)
                const_spec((P, E)), const_spec((P, E)),          # norm2 gamma/beta
                const_spec((E, 3 * E)), const_spec((1, 3 * E)),  # W1^T (bf16), b1
                const_spec((3 * E, E)), const_spec((1, E)),      # W2^T (bf16), b2
            ],
            out_specs=pl.BlockSpec((1, P, E), lambda b: (b, 0, 0)),
            compiler_params=pltpu.CompilerParams(
                dimension_semantics=("parallel",),
                # Toy shapes: a low scoped limit is plenty.  Re-derive per chip
                # at real sizes (v5e/v6e have 128 MiB physical VMEM, v7x 64).
                vmem_limit_bytes=32 * 1024 * 1024),
        )

    args = (x, g1, b1, wqkv_bf, g2, b2, w1t_bf, bias1_2d, w2t_bf, bias2_2d)
    try:
        out = build(True)(*args)
        return jax.block_until_ready(out)
    except Exception:
        # pipeline_mode=pl.Buffered(1) unsupported on this jax version:
        # fall back to default double-buffered constant operands.
        return build(False)(*args)


# ------------------------------ pure-JAX reference ----------------------------

def transformer_ref(x, params, *, heads):
    B, P, E = x.shape
    Dh = E // heads
    g1, b1, wqkv, g2, b2, w1, bias1, w2, bias2 = params

    def ln(z, g, bt):
        mu = jnp.mean(z, axis=(1, 2), keepdims=True)
        var = jnp.mean((z - mu) ** 2, axis=(1, 2), keepdims=True)
        return (z - mu) / jnp.sqrt(var + 1e-5) * g + bt

    out = ln(x, g1, b1)
    out = out @ wqkv.T                                        # (B, P, 3E)
    out = out.reshape(B, P, 3, heads, Dh)
    out = jnp.transpose(out, (2, 0, 3, 1, 4))                 # (3, B, H, P, Dh)
    q, k, v = out[0], out[1], out[2]
    dp = jnp.einsum('bhqd,bhkd->bhqk', q, k) / math.sqrt(Dh)
    dp = jax.nn.softmax(dp, axis=-2)                          # over query axis
    w = jnp.einsum('bhqk,bhkd->bhqd', dp, v)
    w = jnp.transpose(w, (0, 2, 1, 3)).reshape(B, P, E)
    out = x + w
    out1 = out
    out = ln(out, g2, b2)
    out = jax.nn.gelu(out @ w1.T + bias1, approximate=False)
    out = jax.nn.gelu(out @ w2.T + bias2, approximate=False)
    return out + out1


# ----------------------------------- main -------------------------------------

if __name__ == "__main__":
    B, P, E, H = 2, 8, 32, 4   # batch, patches, embed_dim, heads (head_dim = 8)

    key = jax.random.PRNGKey(0)
    ks = jax.random.split(key, 10)
    g1 = 1.0 + 0.1 * jax.random.normal(ks[0], (P, E), jnp.float32)
    b1 = 0.1 * jax.random.normal(ks[1], (P, E), jnp.float32)
    wqkv = 0.1 * jax.random.normal(ks[2], (3 * E, E), jnp.float32)   # linear1.weight
    g2 = 1.0 + 0.1 * jax.random.normal(ks[3], (P, E), jnp.float32)
    b2 = 0.1 * jax.random.normal(ks[4], (P, E), jnp.float32)
    w1 = 0.1 * jax.random.normal(ks[5], (3 * E, E), jnp.float32)     # lin[0].weight
    bias1 = 0.1 * jax.random.normal(ks[6], (3 * E,), jnp.float32)    # lin[0].bias
    w2 = 0.1 * jax.random.normal(ks[7], (E, 3 * E), jnp.float32)     # lin[2].weight
    bias2 = 0.1 * jax.random.normal(ks[8], (E,), jnp.float32)        # lin[2].bias
    x = jax.random.normal(ks[9], (B, P, E), jnp.float32)

    params = (g1, b1, wqkv, g2, b2, w1, bias1, w2, bias2)

    out = jax.block_until_ready(transformer_forward(x, params, heads=H))
    ref = jax.block_until_ready(transformer_ref(x, params, heads=H))
    assert out.shape == (B, P, E)
    # The kernel feeds the MXU bf16 operands (f32 accumulation) and uses the
    # EUP approximate reciprocal in the softmax/erf, while the reference is
    # pure f32 -- tolerance is set for that precision gap.
    np.testing.assert_allclose(np.asarray(out), np.asarray(ref), rtol=5e-2, atol=5e-2)

    print("KERNEL_OK")
</pallas_src>

<mosaic_0001>
module attributes {stable_mosaic.version = 11 : i64} {
  func.func @transformer_kernel(%arg0: i32, %arg1: memref<1x8x32xf32, #tpu.memory_space<vmem>>, %arg2: memref<8x32xf32, #tpu.memory_space<vmem>>, %arg3: memref<8x32xf32, #tpu.memory_space<vmem>>, %arg4: memref<96x32xbf16, #tpu.memory_space<vmem>>, %arg5: memref<8x32xf32, #tpu.memory_space<vmem>>, %arg6: memref<8x32xf32, #tpu.memory_space<vmem>>, %arg7: memref<32x96xbf16, #tpu.memory_space<vmem>>, %arg8: memref<1x96xf32, #tpu.memory_space<vmem>>, %arg9: memref<96x32xbf16, #tpu.memory_space<vmem>>, %arg10: memref<1x32xf32, #tpu.memory_space<vmem>>, %arg11: memref<1x8x32xf32, #tpu.memory_space<vmem>>) attributes {dimension_semantics = [#tpu.dimension_semantics<parallel>], iteration_bounds = array<i64: 2>, scalar_prefetch = 0 : i64, scratch_operands = 0 : i64, tpu.core_type = #tpu.core_type<tc>, window_params = [{transform_indices = @transform_0, window_bounds = array<i64: 1, 8, 32>}, {pipeline_mode = #tpu.pipeline_mode<synchronous>, transform_indices = @transform_1, window_bounds = array<i64: 8, 32>}, {pipeline_mode = #tpu.pipeline_mode<synchronous>, transform_indices = @transform_2, window_bounds = array<i64: 8, 32>}, {pipeline_mode = #tpu.pipeline_mode<synchronous>, transform_indices = @transform_3, window_bounds = array<i64: 96, 32>}, {pipeline_mode = #tpu.pipeline_mode<synchronous>, transform_indices = @transform_4, window_bounds = array<i64: 8, 32>}, {pipeline_mode = #tpu.pipeline_mode<synchronous>, transform_indices = @transform_5, window_bounds = array<i64: 8, 32>}, {pipeline_mode = #tpu.pipeline_mode<synchronous>, transform_indices = @transform_6, window_bounds = array<i64: 32, 96>}, {pipeline_mode = #tpu.pipeline_mode<synchronous>, transform_indices = @transform_7, window_bounds = array<i64: 1, 96>}, {pipeline_mode = #tpu.pipeline_mode<synchronous>, transform_indices = @transform_8, window_bounds = array<i64: 96, 32>}, {pipeline_mode = #tpu.pipeline_mode<synchronous>, transform_indices = @transform_9, window_bounds = array<i64: 1, 32>}, {transform_indices = @transform_10, window_bounds = array<i64: 1, 8, 32>}]} {
    %c0 = arith.constant 0 : index
    %c0_0 = arith.constant 0 : index
    %c0_1 = arith.constant 0 : index
    %0 = vector.load %arg1[%c0, %c0_0, %c0_1] : memref<1x8x32xf32, #tpu.memory_space<vmem>>, vector<1x8x32xf32>
    %1 = vector.shape_cast %0 : vector<1x8x32xf32> to vector<8x32xf32>
    %c0_2 = arith.constant 0 : index
    %c0_3 = arith.constant 0 : index
    %2 = vector.load %arg2[%c0_2, %c0_3] : memref<8x32xf32, #tpu.memory_space<vmem>>, vector<8x32xf32>
    %c0_4 = arith.constant 0 : index
    %c0_5 = arith.constant 0 : index
    %3 = vector.load %arg3[%c0_4, %c0_5] : memref<8x32xf32, #tpu.memory_space<vmem>>, vector<8x32xf32>
    %cst = arith.constant dense<0.000000e+00> : vector<8xf32>
    %4 = vector.multi_reduction <add>, %1, %cst [1] : vector<8x32xf32> to vector<8xf32>
    %5 = vector.shape_cast %4 : vector<8xf32> to vector<8x1xf32>
    %cst_6 = arith.constant 3.200000e+01 : f32
    %6 = vector.broadcast %cst_6 : f32 to vector<8x1xf32>
    %7 = arith.divf %5, %6 : vector<8x1xf32>
    %cst_7 = arith.constant dense<0.000000e+00> : vector<1xf32>
    %8 = vector.multi_reduction <add>, %7, %cst_7 [0] : vector<8x1xf32> to vector<1xf32>
    %9 = vector.shape_cast %8 : vector<1xf32> to vector<1x1xf32>
    %cst_8 = arith.constant 8.000000e+00 : f32
    %10 = vector.broadcast %cst_8 : f32 to vector<1x1xf32>
    %11 = arith.divf %9, %10 : vector<1x1xf32>
    %12 = vector.broadcast %11 : vector<1x1xf32> to vector<8x32xf32>
    %13 = arith.subf %1, %12 : vector<8x32xf32>
    %14 = arith.mulf %13, %13 : vector<8x32xf32>
    %cst_9 = arith.constant dense<0.000000e+00> : vector<8xf32>
    %15 = vector.multi_reduction <add>, %14, %cst_9 [1] : vector<8x32xf32> to vector<8xf32>
    %16 = vector.shape_cast %15 : vector<8xf32> to vector<8x1xf32>
    %cst_10 = arith.constant 3.200000e+01 : f32
    %17 = vector.broadcast %cst_10 : f32 to vector<8x1xf32>
    %18 = arith.divf %16, %17 : vector<8x1xf32>
    %cst_11 = arith.constant dense<0.000000e+00> : vector<1xf32>
    %19 = vector.multi_reduction <add>, %18, %cst_11 [0] : vector<8x1xf32> to vector<1xf32>
    %20 = vector.shape_cast %19 : vector<1xf32> to vector<1x1xf32>
    %cst_12 = arith.constant 8.000000e+00 : f32
    %21 = vector.broadcast %cst_12 : f32 to vector<1x1xf32>
    %22 = arith.divf %20, %21 : vector<1x1xf32>
    %cst_13 = arith.constant 9.99999974E-6 : f32
    %23 = vector.broadcast %cst_13 : f32 to vector<1x1xf32>
    %24 = arith.addf %22, %23 : vector<1x1xf32>
    %25 = math.rsqrt %24 : vector<1x1xf32>
    %26 = vector.broadcast %25 : vector<1x1xf32> to vector<8x32xf32>
    %27 = arith.mulf %13, %26 : vector<8x32xf32>
    %28 = arith.mulf %27, %2 : vector<8x32xf32>
    %29 = arith.addf %28, %3 : vector<8x32xf32>
    %c0_14 = arith.constant 0 : index
    %c0_15 = arith.constant 0 : index
    %30 = vector.load %arg4[%c0_14, %c0_15] : memref<96x32xbf16, #tpu.memory_space<vmem>>, vector<96x32xbf16>
    %31 = arith.truncf %29 : vector<8x32xf32> to vector<8x32xbf16>
    %cst_16 = arith.constant dense<0.000000e+00> : vector<96x8xf32>
    %32 = tpu.matmul %30, %31, %cst_16 {dimension_numbers = #tpu.dot_dimension_numbers<[1], [1], [0], [0], [0, 0, 1, 0], [], []>} : vector<96x32xbf16>, vector<8x32xbf16>, vector<96x8xf32> -> vector<96x8xf32>
    %33 = vector.extract_strided_slice %32 {offsets = [0, 0], sizes = [8, 8], strides = [1, 1]} : vector<96x8xf32> to vector<8x8xf32>
    %34 = tpu.transpose %33, [1, 0] : vector<8x8xf32> -> vector<8x8xf32>
    %35 = vector.extract_strided_slice %32 {offsets = [8, 0], sizes = [8, 8], strides = [1, 1]} : vector<96x8xf32> to vector<8x8xf32>
    %36 = tpu.transpose %35, [1, 0] : vector<8x8xf32> -> vector<8x8xf32>
    %37 = vector.extract_strided_slice %32 {offsets = [16, 0], sizes = [8, 8], strides = [1, 1]} : vector<96x8xf32> to vector<8x8xf32>
    %38 = tpu.transpose %37, [1, 0] : vector<8x8xf32> -> vector<8x8xf32>
    %39 = vector.extract_strided_slice %32 {offsets = [24, 0], sizes = [8, 8], strides = [1, 1]} : vector<96x8xf32> to vector<8x8xf32>
    %40 = tpu.transpose %39, [1, 0] : vector<8x8xf32> -> vector<8x8xf32>
    %41 = vector.shape_cast %34 : vector<8x8xf32> to vector<1x8x8xf32>
    %42 = vector.shape_cast %36 : vector<8x8xf32> to vector<1x8x8xf32>
    %43 = vector.shape_cast %38 : vector<8x8xf32> to vector<1x8x8xf32>
    %44 = vector.shape_cast %40 : vector<8x8xf32> to vector<1x8x8xf32>
    %45 = tpu.concatenate %41, %42, %43, %44 in 0 : vector<1x8x8xf32>, vector<1x8x8xf32>, vector<1x8x8xf32>, vector<1x8x8xf32> -> vector<4x8x8xf32>
    %46 = vector.extract_strided_slice %32 {offsets = [32, 0], sizes = [8, 8], strides = [1, 1]} : vector<96x8xf32> to vector<8x8xf32>
    %47 = tpu.transpose %46, [1, 0] : vector<8x8xf32> -> vector<8x8xf32>
    %48 = vector.extract_strided_slice %32 {offsets = [40, 0], sizes = [8, 8], strides = [1, 1]} : vector<96x8xf32> to vector<8x8xf32>
    %49 = tpu.transpose %48, [1, 0] : vector<8x8xf32> -> vector<8x8xf32>
    %50 = vector.extract_strided_slice %32 {offsets = [48, 0], sizes = [8, 8], strides = [1, 1]} : vector<96x8xf32> to vector<8x8xf32>
    %51 = tpu.transpose %50, [1, 0] : vector<8x8xf32> -> vector<8x8xf32>
    %52 = vector.extract_strided_slice %32 {offsets = [56, 0], sizes = [8, 8], strides = [1, 1]} : vector<96x8xf32> to vector<8x8xf32>
    %53 = tpu.transpose %52, [1, 0] : vector<8x8xf32> -> vector<8x8xf32>
    %54 = vector.shape_cast %47 : vector<8x8xf32> to vector<1x8x8xf32>
    %55 = vector.shape_cast %49 : vector<8x8xf32> to vector<1x8x8xf32>
    %56 = vector.shape_cast %51 : vector<8x8xf32> to vector<1x8x8xf32>
    %57 = vector.shape_cast %53 : vector<8x8xf32> to vector<1x8x8xf32>
    %58 = tpu.concatenate %54, %55, %56, %57 in 0 : vector<1x8x8xf32>, vector<1x8x8xf32>, vector<1x8x8xf32>, vector<1x8x8xf32> -> vector<4x8x8xf32>
    %59 = vector.extract_strided_slice %32 {offsets = [64, 0], sizes = [8, 8], strides = [1, 1]} : vector<96x8xf32> to vector<8x8xf32>
    %60 = tpu.transpose %59, [1, 0] : vector<8x8xf32> -> vector<8x8xf32>
    %61 = vector.extract_strided_slice %32 {offsets = [72, 0], sizes = [8, 8], strides = [1, 1]} : vector<96x8xf32> to vector<8x8xf32>
    %62 = tpu.transpose %61, [1, 0] : vector<8x8xf32> -> vector<8x8xf32>
    %63 = vector.extract_strided_slice %32 {offsets = [80, 0], sizes = [8, 8], strides = [1, 1]} : vector<96x8xf32> to vector<8x8xf32>
    %64 = tpu.transpose %63, [1, 0] : vector<8x8xf32> -> vector<8x8xf32>
    %65 = vector.extract_strided_slice %32 {offsets = [88, 0], sizes = [8, 8], strides = [1, 1]} : vector<96x8xf32> to vector<8x8xf32>
    %66 = tpu.transpose %65, [1, 0] : vector<8x8xf32> -> vector<8x8xf32>
    %67 = vector.shape_cast %60 : vector<8x8xf32> to vector<1x8x8xf32>
    %68 = vector.shape_cast %62 : vector<8x8xf32> to vector<1x8x8xf32>
    %69 = vector.shape_cast %64 : vector<8x8xf32> to vector<1x8x8xf32>
    %70 = vector.shape_cast %66 : vector<8x8xf32> to vector<1x8x8xf32>
    %71 = tpu.concatenate %67, %68, %69, %70 in 0 : vector<1x8x8xf32>, vector<1x8x8xf32>, vector<1x8x8xf32>, vector<1x8x8xf32> -> vector<4x8x8xf32>
    %72 = arith.truncf %45 : vector<4x8x8xf32> to vector<4x8x8xbf16>
    %73 = arith.truncf %58 : vector<4x8x8xf32> to vector<4x8x8xbf16>
    %cst_17 = arith.constant dense<0.000000e+00> : vector<4x8x8xf32>
    %74 = tpu.matmul %72, %73, %cst_17 {dimension_numbers = #tpu.dot_dimension_numbers<[2], [2], [1], [1], [0, 0, 0, 1, 1, 1], [0], [0]>} : vector<4x8x8xbf16>, vector<4x8x8xbf16>, vector<4x8x8xf32> -> vector<4x8x8xf32>
    %cst_18 = arith.constant 0.353553385 : f32
    %75 = vector.broadcast %cst_18 : f32 to vector<4x8x8xf32>
    %76 = arith.mulf %74, %75 : vector<4x8x8xf32>
    %cst_19 = arith.constant dense<0xFF800000> : vector<4x8xf32>
    %77 = vector.multi_reduction <maximumf>, %76, %cst_19 [1] : vector<4x8x8xf32> to vector<4x8xf32>
    %78 = vector.shape_cast %77 : vector<4x8xf32> to vector<4x1x8xf32>
    %79 = vector.broadcast %78 : vector<4x1x8xf32> to vector<4x8x8xf32>
    %80 = arith.subf %76, %79 : vector<4x8x8xf32>
    %81 = math.exp %80 : vector<4x8x8xf32>
    %cst_20 = arith.constant dense<0.000000e+00> : vector<4x8xf32>
    %82 = vector.multi_reduction <add>, %81, %cst_20 [1] : vector<4x8x8xf32> to vector<4x8xf32>
    %83 = vector.shape_cast %82 : vector<4x8xf32> to vector<4x1x8xf32>
    %84 = tpu.reciprocal %83 {approx = true} : vector<4x1x8xf32> -> vector<4x1x8xf32>
    %85 = vector.broadcast %84 : vector<4x1x8xf32> to vector<4x8x8xf32>
    %86 = arith.mulf %81, %85 : vector<4x8x8xf32>
    %87 = arith.truncf %86 : vector<4x8x8xf32> to vector<4x8x8xbf16>
    %88 = arith.truncf %71 : vector<4x8x8xf32> to vector<4x8x8xbf16>
    %cst_21 = arith.constant dense<0.000000e+00> : vector<4x8x8xf32>
    %89 = tpu.matmul %87, %88, %cst_21 {dimension_numbers = #tpu.dot_dimension_numbers<[2], [1], [1], [2], [0, 0, 0, 1, 1, 2], [0], [0]>} : vector<4x8x8xbf16>, vector<4x8x8xbf16>, vector<4x8x8xf32> -> vector<4x8x8xf32>
    %90 = vector.extract_strided_slice %89 {offsets = [0, 0, 0], sizes = [1, 8, 8], strides = [1, 1, 1]} : vector<4x8x8xf32> to vector<1x8x8xf32>
    %91 = vector.shape_cast %90 : vector<1x8x8xf32> to vector<8x8xf32>
    %92 = vector.extract_strided_slice %89 {offsets = [1, 0, 0], sizes = [1, 8, 8], strides = [1, 1, 1]} : vector<4x8x8xf32> to vector<1x8x8xf32>
    %93 = vector.shape_cast %92 : vector<1x8x8xf32> to vector<8x8xf32>
    %94 = vector.extract_strided_slice %89 {offsets = [2, 0, 0], sizes = [1, 8, 8], strides = [1, 1, 1]} : vector<4x8x8xf32> to vector<1x8x8xf32>
    %95 = vector.shape_cast %94 : vector<1x8x8xf32> to vector<8x8xf32>
    %96 = vector.extract_strided_slice %89 {offsets = [3, 0, 0], sizes = [1, 8, 8], strides = [1, 1, 1]} : vector<4x8x8xf32> to vector<1x8x8xf32>
    %97 = vector.shape_cast %96 : vector<1x8x8xf32> to vector<8x8xf32>
    %98 = tpu.concatenate %91, %93, %95, %97 in 1 : vector<8x8xf32>, vector<8x8xf32>, vector<8x8xf32>, vector<8x8xf32> -> vector<8x32xf32>
    %99 = arith.addf %1, %98 : vector<8x32xf32>
    %c0_22 = arith.constant 0 : index
    %c0_23 = arith.constant 0 : index
    %100 = vector.load %arg5[%c0_22, %c0_23] : memref<8x32xf32, #tpu.memory_space<vmem>>, vector<8x32xf32>
    %c0_24 = arith.constant 0 : index
    %c0_25 = arith.constant 0 : index
    %101 = vector.load %arg6[%c0_24, %c0_25] : memref<8x32xf32, #tpu.memory_space<vmem>>, vector<8x32xf32>
    %cst_26 = arith.constant dense<0.000000e+00> : vector<8xf32>
    %102 = vector.multi_reduction <add>, %99, %cst_26 [1] : vector<8x32xf32> to vector<8xf32>
    %103 = vector.shape_cast %102 : vector<8xf32> to vector<8x1xf32>
    %cst_27 = arith.constant 3.200000e+01 : f32
    %104 = vector.broadcast %cst_27 : f32 to vector<8x1xf32>
    %105 = arith.divf %103, %104 : vector<8x1xf32>
    %cst_28 = arith.constant dense<0.000000e+00> : vector<1xf32>
    %106 = vector.multi_reduction <add>, %105, %cst_28 [0] : vector<8x1xf32> to vector<1xf32>
    %107 = vector.shape_cast %106 : vector<1xf32> to vector<1x1xf32>
    %cst_29 = arith.constant 8.000000e+00 : f32
    %108 = vector.broadcast %cst_29 : f32 to vector<1x1xf32>
    %109 = arith.divf %107, %108 : vector<1x1xf32>
    %110 = vector.broadcast %109 : vector<1x1xf32> to vector<8x32xf32>
    %111 = arith.subf %99, %110 : vector<8x32xf32>
    %112 = arith.mulf %111, %111 : vector<8x32xf32>
    %cst_30 = arith.constant dense<0.000000e+00> : vector<8xf32>
    %113 = vector.multi_reduction <add>, %112, %cst_30 [1] : vector<8x32xf32> to vector<8xf32>
    %114 = vector.shape_cast %113 : vector<8xf32> to vector<8x1xf32>
    %cst_31 = arith.constant 3.200000e+01 : f32
    %115 = vector.broadcast %cst_31 : f32 to vector<8x1xf32>
    %116 = arith.divf %114, %115 : vector<8x1xf32>
    %cst_32 = arith.constant dense<0.000000e+00> : vector<1xf32>
    %117 = vector.multi_reduction <add>, %116, %cst_32 [0] : vector<8x1xf32> to vector<1xf32>
    %118 = vector.shape_cast %117 : vector<1xf32> to vector<1x1xf32>
    %cst_33 = arith.constant 8.000000e+00 : f32
    %119 = vector.broadcast %cst_33 : f32 to vector<1x1xf32>
    %120 = arith.divf %118, %119 : vector<1x1xf32>
    %cst_34 = arith.constant 9.99999974E-6 : f32
    %121 = vector.broadcast %cst_34 : f32 to vector<1x1xf32>
    %122 = arith.addf %120, %121 : vector<1x1xf32>
    %123 = math.rsqrt %122 : vector<1x1xf32>
    %124 = vector.broadcast %123 : vector<1x1xf32> to vector<8x32xf32>
    %125 = arith.mulf %111, %124 : vector<8x32xf32>
    %126 = arith.mulf %125, %100 : vector<8x32xf32>
    %127 = arith.addf %126, %101 : vector<8x32xf32>
    %128 = arith.truncf %127 : vector<8x32xf32> to vector<8x32xbf16>
    %c0_35 = arith.constant 0 : index
    %c0_36 = arith.constant 0 : index
    %129 = vector.load %arg7[%c0_35, %c0_36] : memref<32x96xbf16, #tpu.memory_space<vmem>>, vector<32x96xbf16>
    %cst_37 = arith.constant dense<0.000000e+00> : vector<8x96xf32>
    %130 = tpu.matmul %128, %129, %cst_37 {dimension_numbers = #tpu.dot_dimension_numbers<[1], [0], [0], [1], [0, 0, 1, 1], [], []>} : vector<8x32xbf16>, vector<32x96xbf16>, vector<8x96xf32> -> vector<8x96xf32>
    %c0_38 = arith.constant 0 : index
    %c0_39 = arith.constant 0 : index
    %131 = vector.load %arg8[%c0_38, %c0_39] : memref<1x96xf32, #tpu.memory_space<vmem>>, vector<1x96xf32>
    %132 = vector.broadcast %131 : vector<1x96xf32> to vector<8x96xf32>
    %133 = arith.addf %130, %132 : vector<8x96xf32>
    %cst_40 = arith.constant 5.000000e-01 : f32
    %134 = vector.broadcast %cst_40 : f32 to vector<8x96xf32>
    %135 = arith.mulf %134, %133 : vector<8x96xf32>
    %cst_41 = arith.constant 0.707106769 : f32
    %136 = vector.broadcast %cst_41 : f32 to vector<8x96xf32>
    %137 = arith.mulf %133, %136 : vector<8x96xf32>
    %cst_42 = arith.constant 0.000000e+00 : f32
    %138 = vector.broadcast %cst_42 : f32 to vector<8x96xf32>
    %139 = arith.cmpf oge, %137, %138 : vector<8x96xf32>
    %cst_43 = arith.constant 1.000000e+00 : f32
    %cst_44 = arith.constant -1.000000e+00 : f32
    %140 = vector.broadcast %cst_43 : f32 to vector<8x96xf32>
    %141 = vector.broadcast %cst_44 : f32 to vector<8x96xf32>
    %142 = arith.select %139, %140, %141 : vector<8x96xi1>, vector<8x96xf32>
    %143 = math.absf %137 : vector<8x96xf32>
    %cst_45 = arith.constant 0.327591091 : f32
    %144 = vector.broadcast %cst_45 : f32 to vector<8x96xf32>
    %145 = arith.mulf %144, %143 : vector<8x96xf32>
    %cst_46 = arith.constant 1.000000e+00 : f32
    %146 = vector.broadcast %cst_46 : f32 to vector<8x96xf32>
    %147 = arith.addf %146, %145 : vector<8x96xf32>
    %148 = tpu.reciprocal %147 {approx = true} : vector<8x96xf32> -> vector<8x96xf32>
    %cst_47 = arith.constant 1.06140542 : f32
    %149 = vector.broadcast %cst_47 : f32 to vector<8x96xf32>
    %150 = arith.mulf %149, %148 : vector<8x96xf32>
    %cst_48 = arith.constant -1.45315206 : f32
    %151 = vector.broadcast %cst_48 : f32 to vector<8x96xf32>
    %152 = arith.addf %150, %151 : vector<8x96xf32>
    %153 = arith.mulf %152, %148 : vector<8x96xf32>
    %cst_49 = arith.constant 1.42141378 : f32
    %154 = vector.broadcast %cst_49 : f32 to vector<8x96xf32>
    %155 = arith.addf %153, %154 : vector<8x96xf32>
    %156 = arith.mulf %155, %148 : vector<8x96xf32>
    %cst_50 = arith.constant -0.284496725 : f32
    %157 = vector.broadcast %cst_50 : f32 to vector<8x96xf32>
    %158 = arith.addf %156, %157 : vector<8x96xf32>
    %159 = arith.mulf %158, %148 : vector<8x96xf32>
    %cst_51 = arith.constant 0.254829586 : f32
    %160 = vector.broadcast %cst_51 : f32 to vector<8x96xf32>
    %161 = arith.addf %159, %160 : vector<8x96xf32>
    %162 = arith.mulf %161, %148 : vector<8x96xf32>
    %cst_52 = arith.constant 0.000000e+00 : f32
    %163 = vector.broadcast %cst_52 : f32 to vector<8x96xf32>
    %164 = arith.subf %163, %143 : vector<8x96xf32>
    %165 = arith.mulf %164, %143 : vector<8x96xf32>
    %166 = math.exp %165 : vector<8x96xf32>
    %167 = arith.mulf %162, %166 : vector<8x96xf32>
    %cst_53 = arith.constant 1.000000e+00 : f32
    %168 = vector.broadcast %cst_53 : f32 to vector<8x96xf32>
    %169 = arith.subf %168, %167 : vector<8x96xf32>
    %170 = arith.mulf %142, %169 : vector<8x96xf32>
    %cst_54 = arith.constant 1.000000e+00 : f32
    %171 = vector.broadcast %cst_54 : f32 to vector<8x96xf32>
    %172 = arith.addf %171, %170 : vector<8x96xf32>
    %173 = arith.mulf %135, %172 : vector<8x96xf32>
    %174 = arith.truncf %173 : vector<8x96xf32> to vector<8x96xbf16>
    %c0_55 = arith.constant 0 : index
    %c0_56 = arith.constant 0 : index
    %175 = vector.load %arg9[%c0_55, %c0_56] : memref<96x32xbf16, #tpu.memory_space<vmem>>, vector<96x32xbf16>
    %cst_57 = arith.constant dense<0.000000e+00> : vector<8x32xf32>
    %176 = tpu.matmul %174, %175, %cst_57 {dimension_numbers = #tpu.dot_dimension_numbers<[1], [0], [0], [1], [0, 0, 1, 1], [], []>} : vector<8x96xbf16>, vector<96x32xbf16>, vector<8x32xf32> -> vector<8x32xf32>
    %c0_58 = arith.constant 0 : index
    %c0_59 = arith.constant 0 : index
    %177 = vector.load %arg10[%c0_58, %c0_59] : memref<1x32xf32, #tpu.memory_space<vmem>>, vector<1x32xf32>
    %178 = vector.broadcast %177 : vector<1x32xf32> to vector<8x32xf32>
    %179 = arith.addf %176, %178 : vector<8x32xf32>
    %cst_60 = arith.constant 5.000000e-01 : f32
    %180 = vector.broadcast %cst_60 : f32 to vector<8x32xf32>
    %181 = arith.mulf %180, %179 : vector<8x32xf32>
    %cst_61 = arith.constant 0.707106769 : f32
    %182 = vector.broadcast %cst_61 : f32 to vector<8x32xf32>
    %183 = arith.mulf %179, %182 : vector<8x32xf32>
    %cst_62 = arith.constant 0.000000e+00 : f32
    %184 = vector.broadcast %cst_62 : f32 to vector<8x32xf32>
    %185 = arith.cmpf oge, %183, %184 : vector<8x32xf32>
    %cst_63 = arith.constant 1.000000e+00 : f32
    %cst_64 = arith.constant -1.000000e+00 : f32
    %186 = vector.broadcast %cst_63 : f32 to vector<8x32xf32>
    %187 = vector.broadcast %cst_64 : f32 to vector<8x32xf32>
    %188 = arith.select %185, %186, %187 : vector<8x32xi1>, vector<8x32xf32>
    %189 = math.absf %183 : vector<8x32xf32>
    %cst_65 = arith.constant 0.327591091 : f32
    %190 = vector.broadcast %cst_65 : f32 to vector<8x32xf32>
    %191 = arith.mulf %190, %189 : vector<8x32xf32>
    %cst_66 = arith.constant 1.000000e+00 : f32
    %192 = vector.broadcast %cst_66 : f32 to vector<8x32xf32>
    %193 = arith.addf %192, %191 : vector<8x32xf32>
    %194 = tpu.reciprocal %193 {approx = true} : vector<8x32xf32> -> vector<8x32xf32>
    %cst_67 = arith.constant 1.06140542 : f32
    %195 = vector.broadcast %cst_67 : f32 to vector<8x32xf32>
    %196 = arith.mulf %195, %194 : vector<8x32xf32>
    %cst_68 = arith.constant -1.45315206 : f32
    %197 = vector.broadcast %cst_68 : f32 to vector<8x32xf32>
    %198 = arith.addf %196, %197 : vector<8x32xf32>
    %199 = arith.mulf %198, %194 : vector<8x32xf32>
    %cst_69 = arith.constant 1.42141378 : f32
    %200 = vector.broadcast %cst_69 : f32 to vector<8x32xf32>
    %201 = arith.addf %199, %200 : vector<8x32xf32>
    %202 = arith.mulf %201, %194 : vector<8x32xf32>
    %cst_70 = arith.constant -0.284496725 : f32
    %203 = vector.broadcast %cst_70 : f32 to vector<8x32xf32>
    %204 = arith.addf %202, %203 : vector<8x32xf32>
    %205 = arith.mulf %204, %194 : vector<8x32xf32>
    %cst_71 = arith.constant 0.254829586 : f32
    %206 = vector.broadcast %cst_71 : f32 to vector<8x32xf32>
    %207 = arith.addf %205, %206 : vector<8x32xf32>
    %208 = arith.mulf %207, %194 : vector<8x32xf32>
    %cst_72 = arith.constant 0.000000e+00 : f32
    %209 = vector.broadcast %cst_72 : f32 to vector<8x32xf32>
    %210 = arith.subf %209, %189 : vector<8x32xf32>
    %211 = arith.mulf %210, %189 : vector<8x32xf32>
    %212 = math.exp %211 : vector<8x32xf32>
    %213 = arith.mulf %208, %212 : vector<8x32xf32>
    %cst_73 = arith.constant 1.000000e+00 : f32
    %214 = vector.broadcast %cst_73 : f32 to vector<8x32xf32>
    %215 = arith.subf %214, %213 : vector<8x32xf32>
    %216 = arith.mulf %188, %215 : vector<8x32xf32>
    %cst_74 = arith.constant 1.000000e+00 : f32
    %217 = vector.broadcast %cst_74 : f32 to vector<8x32xf32>
    %218 = arith.addf %217, %216 : vector<8x32xf32>
    %219 = arith.mulf %181, %218 : vector<8x32xf32>
    %220 = arith.addf %219, %99 : vector<8x32xf32>
    %221 = vector.shape_cast %220 : vector<8x32xf32> to vector<1x8x32xf32>
    %c0_75 = arith.constant 0 : index
    %c0_76 = arith.constant 0 : index
    %c0_77 = arith.constant 0 : index
    %222 = vector.load %arg11[%c0_75, %c0_76, %c0_77] : memref<1x8x32xf32, #tpu.memory_space<vmem>>, vector<1x8x32xf32>
    tpu.vector_store %arg11[%c0_75, %c0_76, %c0_77], %221 {strides = array<i32>} : memref<1x8x32xf32, #tpu.memory_space<vmem>>, vector<1x8x32xf32>,
    return
  }
  func.func @transform_0(%arg0: i32) -> (i32, i32, i32) {
    %c0_i32 = arith.constant 0 : i32
    %c0_i32_0 = arith.constant 0 : i32
    %c0_i32_1 = arith.constant 0 : i32
    return %arg0, %c0_i32, %c0_i32_0 : i32, i32, i32
  }
  func.func @transform_1(%arg0: i32) -> (i32, i32) {
    %c0_i32 = arith.constant 0 : i32
    %c0_i32_0 = arith.constant 0 : i32
    %c0_i32_1 = arith.constant 0 : i32
    return %c0_i32, %c0_i32_0 : i32, i32
  }
  func.func @transform_2(%arg0: i32) -> (i32, i32) {
    %c0_i32 = arith.constant 0 : i32
    %c0_i32_0 = arith.constant 0 : i32
    %c0_i32_1 = arith.constant 0 : i32
    return %c0_i32, %c0_i32_0 : i32, i32
  }
  func.func @transform_3(%arg0: i32) -> (i32, i32) {
    %c0_i32 = arith.constant 0 : i32
    %c0_i32_0 = arith.constant 0 : i32
    %c0_i32_1 = arith.constant 0 : i32
    return %c0_i32, %c0_i32_0 : i32, i32
  }
  func.func @transform_4(%arg0: i32) -> (i32, i32) {
    %c0_i32 = arith.constant 0 : i32
    %c0_i32_0 = arith.constant 0 : i32
    %c0_i32_1 = arith.constant 0 : i32
    return %c0_i32, %c0_i32_0 : i32, i32
  }
  func.func @transform_5(%arg0: i32) -> (i32, i32) {
    %c0_i32 = arith.constant 0 : i32
    %c0_i32_0 = arith.constant 0 : i32
    %c0_i32_1 = arith.constant 0 : i32
    return %c0_i32, %c0_i32_0 : i32, i32
  }
  func.func @transform_6(%arg0: i32) -> (i32, i32) {
    %c0_i32 = arith.constant 0 : i32
    %c0_i32_0 = arith.constant 0 : i32
    %c0_i32_1 = arith.constant 0 : i32
    return %c0_i32, %c0_i32_0 : i32, i32
  }
  func.func @transform_7(%arg0: i32) -> (i32, i32) {
    %c0_i32 = arith.constant 0 : i32
    %c0_i32_0 = arith.constant 0 : i32
    %c0_i32_1 = arith.constant 0 : i32
    return %c0_i32, %c0_i32_0 : i32, i32
  }
  func.func @transform_8(%arg0: i32) -> (i32, i32) {
    %c0_i32 = arith.constant 0 : i32
    %c0_i32_0 = arith.constant 0 : i32
    %c0_i32_1 = arith.constant 0 : i32
    return %c0_i32, %c0_i32_0 : i32, i32
  }
  func.func @transform_9(%arg0: i32) -> (i32, i32) {
    %c0_i32 = arith.constant 0 : i32
    %c0_i32_0 = arith.constant 0 : i32
    %c0_i32_1 = arith.constant 0 : i32
    return %c0_i32, %c0_i32_0 : i32, i32
  }
  func.func @transform_10(%arg0: i32) -> (i32, i32, i32) {
    %c0_i32 = arith.constant 0 : i32
    %c0_i32_0 = arith.constant 0 : i32
    %c0_i32_1 = arith.constant 0 : i32
    return %arg0, %c0_i32, %c0_i32_0 : i32, i32, i32
  }
}

module attributes {stable_mosaic.version = 11 : i64} {
  func.func @transformer_kernel(%arg0: i32, %arg1: memref<1x8x32xf32, #tpu.memory_space<vmem>>, %arg2: memref<8x32xf32, #tpu.memory_space<vmem>>, %arg3: memref<8x32xf32, #tpu.memory_space<vmem>>, %arg4: memref<96x32xbf16, #tpu.memory_space<vmem>>, %arg5: memref<8x32xf32, #tpu.memory_space<vmem>>, %arg6: memref<8x32xf32, #tpu.memory_space<vmem>>, %arg7: memref<32x96xbf16, #tpu.memory_space<vmem>>, %arg8: memref<1x96xf32, #tpu.memory_space<vmem>>, %arg9: memref<96x32xbf16, #tpu.memory_space<vmem>>, %arg10: memref<1x32xf32, #tpu.memory_space<vmem>>, %arg11: memref<1x8x32xf32, #tpu.memory_space<vmem>>) attributes {dimension_semantics = [#tpu.dimension_semantics<parallel>], iteration_bounds = array<i64: 2>, scalar_prefetch = 0 : i64, scratch_operands = 0 : i64, tpu.core_type = #tpu.core_type<tc>, window_params = [{transform_indices = @transform_0, window_bounds = array<i64: 1, 8, 32>}, {pipeline_mode = #tpu.pipeline_mode<synchronous>, transform_indices = @transform_1, window_bounds = array<i64: 8, 32>}, {pipeline_mode = #tpu.pipeline_mode<synchronous>, transform_indices = @transform_2, window_bounds = array<i64: 8, 32>}, {pipeline_mode = #tpu.pipeline_mode<synchronous>, transform_indices = @transform_3, window_bounds = array<i64: 96, 32>}, {pipeline_mode = #tpu.pipeline_mode<synchronous>, transform_indices = @transform_4, window_bounds = array<i64: 8, 32>}, {pipeline_mode = #tpu.pipeline_mode<synchronous>, transform_indices = @transform_5, window_bounds = array<i64: 8, 32>}, {pipeline_mode = #tpu.pipeline_mode<synchronous>, transform_indices = @transform_6, window_bounds = array<i64: 32, 96>}, {pipeline_mode = #tpu.pipeline_mode<synchronous>, transform_indices = @transform_7, window_bounds = array<i64: 1, 96>}, {pipeline_mode = #tpu.pipeline_mode<synchronous>, transform_indices = @transform_8, window_bounds = array<i64: 96, 32>}, {pipeline_mode = #tpu.pipeline_mode<synchronous>, transform_indices = @transform_9, window_bounds = array<i64: 1, 32>}, {transform_indices = @transform_10, window_bounds = array<i64: 1, 8, 32>}]} {
    %c0 = arith.constant 0 : index
    %c0_0 = arith.constant 0 : index
    %c0_1 = arith.constant 0 : index
    %0 = vector.load %arg1[%c0, %c0_0, %c0_1] : memref<1x8x32xf32, #tpu.memory_space<vmem>>, vector<1x8x32xf32>
    %1 = vector.shape_cast %0 : vector<1x8x32xf32> to vector<8x32xf32>
    %c0_2 = arith.constant 0 : index
    %c0_3 = arith.constant 0 : index
    %2 = vector.load %arg2[%c0_2, %c0_3] : memref<8x32xf32, #tpu.memory_space<vmem>>, vector<8x32xf32>
    %c0_4 = arith.constant 0 : index
    %c0_5 = arith.constant 0 : index
    %3 = vector.load %arg3[%c0_4, %c0_5] : memref<8x32xf32, #tpu.memory_space<vmem>>, vector<8x32xf32>
    %cst = arith.constant dense<0.000000e+00> : vector<8xf32>
    %4 = vector.multi_reduction <add>, %1, %cst [1] : vector<8x32xf32> to vector<8xf32>
    %5 = vector.shape_cast %4 : vector<8xf32> to vector<8x1xf32>
    %cst_6 = arith.constant 3.200000e+01 : f32
    %6 = vector.broadcast %cst_6 : f32 to vector<8x1xf32>
    %7 = arith.divf %5, %6 : vector<8x1xf32>
    %cst_7 = arith.constant dense<0.000000e+00> : vector<1xf32>
    %8 = vector.multi_reduction <add>, %7, %cst_7 [0] : vector<8x1xf32> to vector<1xf32>
    %9 = vector.shape_cast %8 : vector<1xf32> to vector<1x1xf32>
    %cst_8 = arith.constant 8.000000e+00 : f32
    %10 = vector.broadcast %cst_8 : f32 to vector<1x1xf32>
    %11 = arith.divf %9, %10 : vector<1x1xf32>
    %12 = vector.broadcast %11 : vector<1x1xf32> to vector<8x32xf32>
    %13 = arith.subf %1, %12 : vector<8x32xf32>
    %14 = arith.mulf %13, %13 : vector<8x32xf32>
    %cst_9 = arith.constant dense<0.000000e+00> : vector<8xf32>
    %15 = vector.multi_reduction <add>, %14, %cst_9 [1] : vector<8x32xf32> to vector<8xf32>
    %16 = vector.shape_cast %15 : vector<8xf32> to vector<8x1xf32>
    %cst_10 = arith.constant 3.200000e+01 : f32
    %17 = vector.broadcast %cst_10 : f32 to vector<8x1xf32>
    %18 = arith.divf %16, %17 : vector<8x1xf32>
    %cst_11 = arith.constant dense<0.000000e+00> : vector<1xf32>
    %19 = vector.multi_reduction <add>, %18, %cst_11 [0] : vector<8x1xf32> to vector<1xf32>
    %20 = vector.shape_cast %19 : vector<1xf32> to vector<1x1xf32>
    %cst_12 = arith.constant 8.000000e+00 : f32
    %21 = vector.broadcast %cst_12 : f32 to vector<1x1xf32>
    %22 = arith.divf %20, %21 : vector<1x1xf32>
    %cst_13 = arith.constant 9.99999974E-6 : f32
    %23 = vector.broadcast %cst_13 : f32 to vector<1x1xf32>
    %24 = arith.addf %22, %23 : vector<1x1xf32>
    %25 = math.rsqrt %24 : vector<1x1xf32>
    %26 = vector.broadcast %25 : vector<1x1xf32> to vector<8x32xf32>
    %27 = arith.mulf %13, %26 : vector<8x32xf32>
    %28 = arith.mulf %27, %2 : vector<8x32xf32>
    %29 = arith.addf %28, %3 : vector<8x32xf32>
    %c0_14 = arith.constant 0 : index
    %c0_15 = arith.constant 0 : index
    %30 = vector.load %arg4[%c0_14, %c0_15] : memref<96x32xbf16, #tpu.memory_space<vmem>>, vector<96x32xbf16>
    %31 = arith.truncf %29 : vector<8x32xf32> to vector<8x32xbf16>
    %cst_16 = arith.constant dense<0.000000e+00> : vector<96x8xf32>
    %32 = tpu.matmul %30, %31, %cst_16 {dimension_numbers = #tpu.dot_dimension_numbers<[1], [1], [0], [0], [0, 0, 1, 0], [], []>} : vector<96x32xbf16>, vector<8x32xbf16>, vector<96x8xf32> -> vector<96x8xf32>
    %33 = vector.extract_strided_slice %32 {offsets = [0, 0], sizes = [8, 8], strides = [1, 1]} : vector<96x8xf32> to vector<8x8xf32>
    %34 = tpu.transpose %33, [1, 0] : vector<8x8xf32> -> vector<8x8xf32>
    %35 = vector.extract_strided_slice %32 {offsets = [8, 0], sizes = [8, 8], strides = [1, 1]} : vector<96x8xf32> to vector<8x8xf32>
    %36 = tpu.transpose %35, [1, 0] : vector<8x8xf32> -> vector<8x8xf32>
    %37 = vector.extract_strided_slice %32 {offsets = [16, 0], sizes = [8, 8], strides = [1, 1]} : vector<96x8xf32> to vector<8x8xf32>
    %38 = tpu.transpose %37, [1, 0] : vector<8x8xf32> -> vector<8x8xf32>
    %39 = vector.extract_strided_slice %32 {offsets = [24, 0], sizes = [8, 8], strides = [1, 1]} : vector<96x8xf32> to vector<8x8xf32>
    %40 = tpu.transpose %39, [1, 0] : vector<8x8xf32> -> vector<8x8xf32>
    %41 = vector.shape_cast %34 : vector<8x8xf32> to vector<1x8x8xf32>
    %42 = vector.shape_cast %36 : vector<8x8xf32> to vector<1x8x8xf32>
    %43 = vector.shape_cast %38 : vector<8x8xf32> to vector<1x8x8xf32>
    %44 = vector.shape_cast %40 : vector<8x8xf32> to vector<1x8x8xf32>
    %45 = tpu.concatenate %41, %42, %43, %44 in 0 : vector<1x8x8xf32>, vector<1x8x8xf32>, vector<1x8x8xf32>, vector<1x8x8xf32> -> vector<4x8x8xf32>
    %46 = vector.extract_strided_slice %32 {offsets = [32, 0], sizes = [8, 8], strides = [1, 1]} : vector<96x8xf32> to vector<8x8xf32>
    %47 = tpu.transpose %46, [1, 0] : vector<8x8xf32> -> vector<8x8xf32>
    %48 = vector.extract_strided_slice %32 {offsets = [40, 0], sizes = [8, 8], strides = [1, 1]} : vector<96x8xf32> to vector<8x8xf32>
    %49 = tpu.transpose %48, [1, 0] : vector<8x8xf32> -> vector<8x8xf32>
    %50 = vector.extract_strided_slice %32 {offsets = [48, 0], sizes = [8, 8], strides = [1, 1]} : vector<96x8xf32> to vector<8x8xf32>
    %51 = tpu.transpose %50, [1, 0] : vector<8x8xf32> -> vector<8x8xf32>
    %52 = vector.extract_strided_slice %32 {offsets = [56, 0], sizes = [8, 8], strides = [1, 1]} : vector<96x8xf32> to vector<8x8xf32>
    %53 = tpu.transpose %52, [1, 0] : vector<8x8xf32> -> vector<8x8xf32>
    %54 = vector.shape_cast %47 : vector<8x8xf32> to vector<1x8x8xf32>
    %55 = vector.shape_cast %49 : vector<8x8xf32> to vector<1x8x8xf32>
    %56 = vector.shape_cast %51 : vector<8x8xf32> to vector<1x8x8xf32>
    %57 = vector.shape_cast %53 : vector<8x8xf32> to vector<1x8x8xf32>
    %58 = tpu.concatenate %54, %55, %56, %57 in 0 : vector<1x8x8xf32>, vector<1x8x8xf32>, vector<1x8x8xf32>, vector<1x8x8xf32> -> vector<4x8x8xf32>
    %59 = vector.extract_strided_slice %32 {offsets = [64, 0], sizes = [8, 8], strides = [1, 1]} : vector<96x8xf32> to vector<8x8xf32>
    %60 = tpu.transpose %59, [1, 0] : vector<8x8xf32> -> vector<8x8xf32>
    %61 = vector.extract_strided_slice %32 {offsets = [72, 0], sizes = [8, 8], strides = [1, 1]} : vector<96x8xf32> to vector<8x8xf32>
    %62 = tpu.transpose %61, [1, 0] : vector<8x8xf32> -> vector<8x8xf32>
    %63 = vector.extract_strided_slice %32 {offsets = [80, 0], sizes = [8, 8], strides = [1, 1]} : vector<96x8xf32> to vector<8x8xf32>
    %64 = tpu.transpose %63, [1, 0] : vector<8x8xf32> -> vector<8x8xf32>
    %65 = vector.extract_strided_slice %32 {offsets = [88, 0], sizes = [8, 8], strides = [1, 1]} : vector<96x8xf32> to vector<8x8xf32>
    %66 = tpu.transpose %65, [1, 0] : vector<8x8xf32> -> vector<8x8xf32>
    %67 = vector.shape_cast %60 : vector<8x8xf32> to vector<1x8x8xf32>
    %68 = vector.shape_cast %62 : vector<8x8xf32> to vector<1x8x8xf32>
    %69 = vector.shape_cast %64 : vector<8x8xf32> to vector<1x8x8xf32>
    %70 = vector.shape_cast %66 : vector<8x8xf32> to vector<1x8x8xf32>
    %71 = tpu.concatenate %67, %68, %69, %70 in 0 : vector<1x8x8xf32>, vector<1x8x8xf32>, vector<1x8x8xf32>, vector<1x8x8xf32> -> vector<4x8x8xf32>
    %72 = arith.truncf %45 : vector<4x8x8xf32> to vector<4x8x8xbf16>
    %73 = arith.truncf %58 : vector<4x8x8xf32> to vector<4x8x8xbf16>
    %cst_17 = arith.constant dense<0.000000e+00> : vector<4x8x8xf32>
    %74 = tpu.matmul %72, %73, %cst_17 {dimension_numbers = #tpu.dot_dimension_numbers<[2], [2], [1], [1], [0, 0, 0, 1, 1, 1], [0], [0]>} : vector<4x8x8xbf16>, vector<4x8x8xbf16>, vector<4x8x8xf32> -> vector<4x8x8xf32>
    %cst_18 = arith.constant 0.353553385 : f32
    %75 = vector.broadcast %cst_18 : f32 to vector<4x8x8xf32>
    %76 = arith.mulf %74, %75 : vector<4x8x8xf32>
    %cst_19 = arith.constant dense<0xFF800000> : vector<4x8xf32>
    %77 = vector.multi_reduction <maximumf>, %76, %cst_19 [1] : vector<4x8x8xf32> to vector<4x8xf32>
    %78 = vector.shape_cast %77 : vector<4x8xf32> to vector<4x1x8xf32>
    %79 = vector.broadcast %78 : vector<4x1x8xf32> to vector<4x8x8xf32>
    %80 = arith.subf %76, %79 : vector<4x8x8xf32>
    %81 = math.exp %80 : vector<4x8x8xf32>
    %cst_20 = arith.constant dense<0.000000e+00> : vector<4x8xf32>
    %82 = vector.multi_reduction <add>, %81, %cst_20 [1] : vector<4x8x8xf32> to vector<4x8xf32>
    %83 = vector.shape_cast %82 : vector<4x8xf32> to vector<4x1x8xf32>
    %84 = tpu.reciprocal %83 {approx = true} : vector<4x1x8xf32> -> vector<4x1x8xf32>
    %85 = vector.broadcast %84 : vector<4x1x8xf32> to vector<4x8x8xf32>
    %86 = arith.mulf %81, %85 : vector<4x8x8xf32>
    %87 = arith.truncf %86 : vector<4x8x8xf32> to vector<4x8x8xbf16>
    %88 = arith.truncf %71 : vector<4x8x8xf32> to vector<4x8x8xbf16>
    %cst_21 = arith.constant dense<0.000000e+00> : vector<4x8x8xf32>
    %89 = tpu.matmul %87, %88, %cst_21 {dimension_numbers = #tpu.dot_dimension_numbers<[2], [1], [1], [2], [0, 0, 0, 1, 1, 2], [0], [0]>} : vector<4x8x8xbf16>, vector<4x8x8xbf16>, vector<4x8x8xf32> -> vector<4x8x8xf32>
    %90 = vector.extract_strided_slice %89 {offsets = [0, 0, 0], sizes = [1, 8, 8], strides = [1, 1, 1]} : vector<4x8x8xf32> to vector<1x8x8xf32>
    %91 = vector.shape_cast %90 : vector<1x8x8xf32> to vector<8x8xf32>
    %92 = vector.extract_strided_slice %89 {offsets = [1, 0, 0], sizes = [1, 8, 8], strides = [1, 1, 1]} : vector<4x8x8xf32> to vector<1x8x8xf32>
    %93 = vector.shape_cast %92 : vector<1x8x8xf32> to vector<8x8xf32>
    %94 = vector.extract_strided_slice %89 {offsets = [2, 0, 0], sizes = [1, 8, 8], strides = [1, 1, 1]} : vector<4x8x8xf32> to vector<1x8x8xf32>
    %95 = vector.shape_cast %94 : vector<1x8x8xf32> to vector<8x8xf32>
    %96 = vector.extract_strided_slice %89 {offsets = [3, 0, 0], sizes = [1, 8, 8], strides = [1, 1, 1]} : vector<4x8x8xf32> to vector<1x8x8xf32>
    %97 = vector.shape_cast %96 : vector<1x8x8xf32> to vector<8x8xf32>
    %98 = tpu.concatenate %91, %93, %95, %97 in 1 : vector<8x8xf32>, vector<8x8xf32>, vector<8x8xf32>, vector<8x8xf32> -> vector<8x32xf32>
    %99 = arith.addf %1, %98 : vector<8x32xf32>
    %c0_22 = arith.constant 0 : index
    %c0_23 = arith.constant 0 : index
    %100 = vector.load %arg5[%c0_22, %c0_23] : memref<8x32xf32, #tpu.memory_space<vmem>>, vector<8x32xf32>
    %c0_24 = arith.constant 0 : index
    %c0_25 = arith.constant 0 : index
    %101 = vector.load %arg6[%c0_24, %c0_25] : memref<8x32xf32, #tpu.memory_space<vmem>>, vector<8x32xf32>
    %cst_26 = arith.constant dense<0.000000e+00> : vector<8xf32>
    %102 = vector.multi_reduction <add>, %99, %cst_26 [1] : vector<8x32xf32> to vector<8xf32>
    %103 = vector.shape_cast %102 : vector<8xf32> to vector<8x1xf32>
    %cst_27 = arith.constant 3.200000e+01 : f32
    %104 = vector.broadcast %cst_27 : f32 to vector<8x1xf32>
    %105 = arith.divf %103, %104 : vector<8x1xf32>
    %cst_28 = arith.constant dense<0.000000e+00> : vector<1xf32>
    %106 = vector.multi_reduction <add>, %105, %cst_28 [0] : vector<8x1xf32> to vector<1xf32>
    %107 = vector.shape_cast %106 : vector<1xf32> to vector<1x1xf32>
    %cst_29 = arith.constant 8.000000e+00 : f32
    %108 = vector.broadcast %cst_29 : f32 to vector<1x1xf32>
    %109 = arith.divf %107, %108 : vector<1x1xf32>
    %110 = vector.broadcast %109 : vector<1x1xf32> to vector<8x32xf32>
    %111 = arith.subf %99, %110 : vector<8x32xf32>
    %112 = arith.mulf %111, %111 : vector<8x32xf32>
    %cst_30 = arith.constant dense<0.000000e+00> : vector<8xf32>
    %113 = vector.multi_reduction <add>, %112, %cst_30 [1] : vector<8x32xf32> to vector<8xf32>
    %114 = vector.shape_cast %113 : vector<8xf32> to vector<8x1xf32>
    %cst_31 = arith.constant 3.200000e+01 : f32
    %115 = vector.broadcast %cst_31 : f32 to vector<8x1xf32>
    %116 = arith.divf %114, %115 : vector<8x1xf32>
    %cst_32 = arith.constant dense<0.000000e+00> : vector<1xf32>
    %117 = vector.multi_reduction <add>, %116, %cst_32 [0] : vector<8x1xf32> to vector<1xf32>
    %118 = vector.shape_cast %117 : vector<1xf32> to vector<1x1xf32>
    %cst_33 = arith.constant 8.000000e+00 : f32
    %119 = vector.broadcast %cst_33 : f32 to vector<1x1xf32>
    %120 = arith.divf %118, %119 : vector<1x1xf32>
    %cst_34 = arith.constant 9.99999974E-6 : f32
    %121 = vector.broadcast %cst_34 : f32 to vector<1x1xf32>
    %122 = arith.addf %120, %121 : vector<1x1xf32>
    %123 = math.rsqrt %122 : vector<1x1xf32>
    %124 = vector.broadcast %123 : vector<1x1xf32> to vector<8x32xf32>
    %125 = arith.mulf %111, %124 : vector<8x32xf32>
    %126 = arith.mulf %125, %100 : vector<8x32xf32>
    %127 = arith.addf %126, %101 : vector<8x32xf32>
    %128 = arith.truncf %127 : vector<8x32xf32> to vector<8x32xbf16>
    %c0_35 = arith.constant 0 : index
    %c0_36 = arith.constant 0 : index
    %129 = vector.load %arg7[%c0_35, %c0_36] : memref<32x96xbf16, #tpu.memory_space<vmem>>, vector<32x96xbf16>
    %cst_37 = arith.constant dense<0.000000e+00> : vector<8x96xf32>
    %130 = tpu.matmul %128, %129, %cst_37 {dimension_numbers = #tpu.dot_dimension_numbers<[1], [0], [0], [1], [0, 0, 1, 1], [], []>} : vector<8x32xbf16>, vector<32x96xbf16>, vector<8x96xf32> -> vector<8x96xf32>
    %c0_38 = arith.constant 0 : index
    %c0_39 = arith.constant 0 : index
    %131 = vector.load %arg8[%c0_38, %c0_39] : memref<1x96xf32, #tpu.memory_space<vmem>>, vector<1x96xf32>
    %132 = vector.broadcast %131 : vector<1x96xf32> to vector<8x96xf32>
    %133 = arith.addf %130, %132 : vector<8x96xf32>
    %cst_40 = arith.constant 5.000000e-01 : f32
    %134 = vector.broadcast %cst_40 : f32 to vector<8x96xf32>
    %135 = arith.mulf %134, %133 : vector<8x96xf32>
    %cst_41 = arith.constant 0.707106769 : f32
    %136 = vector.broadcast %cst_41 : f32 to vector<8x96xf32>
    %137 = arith.mulf %133, %136 : vector<8x96xf32>
    %cst_42 = arith.constant 0.000000e+00 : f32
    %138 = vector.broadcast %cst_42 : f32 to vector<8x96xf32>
    %139 = arith.cmpf oge, %137, %138 : vector<8x96xf32>
    %cst_43 = arith.constant 1.000000e+00 : f32
    %cst_44 = arith.constant -1.000000e+00 : f32
    %140 = vector.broadcast %cst_43 : f32 to vector<8x96xf32>
    %141 = vector.broadcast %cst_44 : f32 to vector<8x96xf32>
    %142 = arith.select %139, %140, %141 : vector<8x96xi1>, vector<8x96xf32>
    %143 = math.absf %137 : vector<8x96xf32>
    %cst_45 = arith.constant 0.327591091 : f32
    %144 = vector.broadcast %cst_45 : f32 to vector<8x96xf32>
    %145 = arith.mulf %144, %143 : vector<8x96xf32>
    %cst_46 = arith.constant 1.000000e+00 : f32
    %146 = vector.broadcast %cst_46 : f32 to vector<8x96xf32>
    %147 = arith.addf %146, %145 : vector<8x96xf32>
    %148 = tpu.reciprocal %147 {approx = true} : vector<8x96xf32> -> vector<8x96xf32>
    %cst_47 = arith.constant 1.06140542 : f32
    %149 = vector.broadcast %cst_47 : f32 to vector<8x96xf32>
    %150 = arith.mulf %149, %148 : vector<8x96xf32>
    %cst_48 = arith.constant -1.45315206 : f32
    %151 = vector.broadcast %cst_48 : f32 to vector<8x96xf32>
    %152 = arith.addf %150, %151 : vector<8x96xf32>
    %153 = arith.mulf %152, %148 : vector<8x96xf32>
    %cst_49 = arith.constant 1.42141378 : f32
    %154 = vector.broadcast %cst_49 : f32 to vector<8x96xf32>
    %155 = arith.addf %153, %154 : vector<8x96xf32>
    %156 = arith.mulf %155, %148 : vector<8x96xf32>
    %cst_50 = arith.constant -0.284496725 : f32
    %157 = vector.broadcast %cst_50 : f32 to vector<8x96xf32>
    %158 = arith.addf %156, %157 : vector<8x96xf32>
    %159 = arith.mulf %158, %148 : vector<8x96xf32>
    %cst_51 = arith.constant 0.254829586 : f32
    %160 = vector.broadcast %cst_51 : f32 to vector<8x96xf32>
    %161 = arith.addf %159, %160 : vector<8x96xf32>
    %162 = arith.mulf %161, %148 : vector<8x96xf32>
    %cst_52 = arith.constant 0.000000e+00 : f32
    %163 = vector.broadcast %cst_52 : f32 to vector<8x96xf32>
    %164 = arith.subf %163, %143 : vector<8x96xf32>
    %165 = arith.mulf %164, %143 : vector<8x96xf32>
    %166 = math.exp %165 : vector<8x96xf32>
    %167 = arith.mulf %162, %166 : vector<8x96xf32>
    %cst_53 = arith.constant 1.000000e+00 : f32
    %168 = vector.broadcast %cst_53 : f32 to vector<8x96xf32>
    %169 = arith.subf %168, %167 : vector<8x96xf32>
    %170 = arith.mulf %142, %169 : vector<8x96xf32>
    %cst_54 = arith.constant 1.000000e+00 : f32
    %171 = vector.broadcast %cst_54 : f32 to vector<8x96xf32>
    %172 = arith.addf %171, %170 : vector<8x96xf32>
    %173 = arith.mulf %135, %172 : vector<8x96xf32>
    %174 = arith.truncf %173 : vector<8x96xf32> to vector<8x96xbf16>
    %c0_55 = arith.constant 0 : index
    %c0_56 = arith.constant 0 : index
    %175 = vector.load %arg9[%c0_55, %c0_56] : memref<96x32xbf16, #tpu.memory_space<vmem>>, vector<96x32xbf16>
    %cst_57 = arith.constant dense<0.000000e+00> : vector<8x32xf32>
    %176 = tpu.matmul %174, %175, %cst_57 {dimension_numbers = #tpu.dot_dimension_numbers<[1], [0], [0], [1], [0, 0, 1, 1], [], []>} : vector<8x96xbf16>, vector<96x32xbf16>, vector<8x32xf32> -> vector<8x32xf32>
    %c0_58 = arith.constant 0 : index
    %c0_59 = arith.constant 0 : index
    %177 = vector.load %arg10[%c0_58, %c0_59] : memref<1x32xf32, #tpu.memory_space<vmem>>, vector<1x32xf32>
    %178 = vector.broadcast %177 : vector<1x32xf32> to vector<8x32xf32>
    %179 = arith.addf %176, %178 : vector<8x32xf32>
    %cst_60 = arith.constant 5.000000e-01 : f32
    %180 = vector.broadcast %cst_60 : f32 to vector<8x32xf32>
    %181 = arith.mulf %180, %179 : vector<8x32xf32>
    %cst_61 = arith.constant 0.707106769 : f32
    %182 = vector.broadcast %cst_61 : f32 to vector<8x32xf32>
    %183 = arith.mulf %179, %182 : vector<8x32xf32>
    %cst_62 = arith.constant 0.000000e+00 : f32
    %184 = vector.broadcast %cst_62 : f32 to vector<8x32xf32>
    %185 = arith.cmpf oge, %183, %184 : vector<8x32xf32>
    %cst_63 = arith.constant 1.000000e+00 : f32
    %cst_64 = arith.constant -1.000000e+00 : f32
    %186 = vector.broadcast %cst_63 : f32 to vector<8x32xf32>
    %187 = vector.broadcast %cst_64 : f32 to vector<8x32xf32>
    %188 = arith.select %185, %186, %187 : vector<8x32xi1>, vector<8x32xf32>
    %189 = math.absf %183 : vector<8x32xf32>
    %cst_65 = arith.constant 0.327591091 : f32
    %190 = vector.broadcast %cst_65 : f32 to vector<8x32xf32>
    %191 = arith.mulf %190, %189 : vector<8x32xf32>
    %cst_66 = arith.constant 1.000000e+00 : f32
    %192 = vector.broadcast %cst_66 : f32 to vector<8x32xf32>
    %193 = arith.addf %192, %191 : vector<8x32xf32>
    %194 = tpu.reciprocal %193 {approx = true} : vector<8x32xf32> -> vector<8x32xf32>
    %cst_67 = arith.constant 1.06140542 : f32
    %195 = vector.broadcast %cst_67 : f32 to vector<8x32xf32>
    %196 = arith.mulf %195, %194 : vector<8x32xf32>
    %cst_68 = arith.constant -1.45315206 : f32
    %197 = vector.broadcast %cst_68 : f32 to vector<8x32xf32>
    %198 = arith.addf %196, %197 : vector<8x32xf32>
    %199 = arith.mulf %198, %194 : vector<8x32xf32>
    %cst_69 = arith.constant 1.42141378 : f32
    %200 = vector.broadcast %cst_69 : f32 to vector<8x32xf32>
    %201 = arith.addf %199, %200 : vector<8x32xf32>
    %202 = arith.mulf %201, %194 : vector<8x32xf32>
    %cst_70 = arith.constant -0.284496725 : f32
    %203 = vector.broadcast %cst_70 : f32 to vector<8x32xf32>
    %204 = arith.addf %202, %203 : vector<8x32xf32>
    %205 = arith.mulf %204, %194 : vector<8x32xf32>
    %cst_71 = arith.constant 0.254829586 : f32
    %206 = vector.broadcast %cst_71 : f32 to vector<8x32xf32>
    %207 = arith.addf %205, %206 : vector<8x32xf32>
    %208 = arith.mulf %207, %194 : vector<8x32xf32>
    %cst_72 = arith.constant 0.000000e+00 : f32
    %209 = vector.broadcast %cst_72 : f32 to vector<8x32xf32>
    %210 = arith.subf %209, %189 : vector<8x32xf32>
    %211 = arith.mulf %210, %189 : vector<8x32xf32>
    %212 = math.exp %211 : vector<8x32xf32>
    %213 = arith.mulf %208, %212 : vector<8x32xf32>
    %cst_73 = arith.constant 1.000000e+00 : f32
    %214 = vector.broadcast %cst_73 : f32 to vector<8x32xf32>
    %215 = arith.subf %214, %213 : vector<8x32xf32>
    %216 = arith.mulf %188, %215 : vector<8x32xf32>
    %cst_74 = arith.constant 1.000000e+00 : f32
    %217 = vector.broadcast %cst_74 : f32 to vector<8x32xf32>
    %218 = arith.addf %217, %216 : vector<8x32xf32>
    %219 = arith.mulf %181, %218 : vector<8x32xf32>
    %220 = arith.addf %219, %99 : vector<8x32xf32>
    %221 = vector.shape_cast %220 : vector<8x32xf32> to vector<1x8x32xf32>
    %c0_75 = arith.constant 0 : index
    %c0_76 = arith.constant 0 : index
    %c0_77 = arith.constant 0 : index
    %222 = vector.load %arg11[%c0_75, %c0_76, %c0_77] : memref<1x8x32xf32, #tpu.memory_space<vmem>>, vector<1x8x32xf32>
    tpu.vector_store %arg11[%c0_75, %c0_76, %c0_77], %221 {strides = array<i32>} : memref<1x8x32xf32, #tpu.memory_space<vmem>>, vector<1x8x32xf32>,
    return
  }
  func.func @transform_0(%arg0: i32) -> (i32, i32, i32) {
    %c0_i32 = arith.constant 0 : i32
    %c0_i32_0 = arith.constant 0 : i32
    %c0_i32_1 = arith.constant 0 : i32
    return %arg0, %c0_i32, %c0_i32_0 : i32, i32, i32
  }
  func.func @transform_1(%arg0: i32) -> (i32, i32) {
    %c0_i32 = arith.constant 0 : i32
    %c0_i32_0 = arith.constant 0 : i32
    %c0_i32_1 = arith.constant 0 : i32
    return %c0_i32, %c0_i32_0 : i32, i32
  }
  func.func @transform_2(%arg0: i32) -> (i32, i32) {
    %c0_i32 = arith.constant 0 : i32
    %c0_i32_0 = arith.constant 0 : i32
    %c0_i32_1 = arith.constant 0 : i32
    return %c0_i32, %c0_i32_0 : i32, i32
  }
  func.func @transform_3(%arg0: i32) -> (i32, i32) {
    %c0_i32 = arith.constant 0 : i32
    %c0_i32_0 = arith.constant 0 : i32
    %c0_i32_1 = arith.constant 0 : i32
    return %c0_i32, %c0_i32_0 : i32, i32
  }
  func.func @transform_4(%arg0: i32) -> (i32, i32) {
    %c0_i32 = arith.constant 0 : i32
    %c0_i32_0 = arith.constant 0 : i32
    %c0_i32_1 = arith.constant 0 : i32
    return %c0_i32, %c0_i32_0 : i32, i32
  }
  func.func @transform_5(%arg0: i32) -> (i32, i32) {
    %c0_i32 = arith.constant 0 : i32
    %c0_i32_0 = arith.constant 0 : i32
    %c0_i32_1 = arith.constant 0 : i32
    return %c0_i32, %c0_i32_0 : i32, i32
  }
  func.func @transform_6(%arg0: i32) -> (i32, i32) {
    %c0_i32 = arith.constant 0 : i32
    %c0_i32_0 = arith.constant 0 : i32
    %c0_i32_1 = arith.constant 0 : i32
    return %c0_i32, %c0_i32_0 : i32, i32
  }
  func.func @transform_7(%arg0: i32) -> (i32, i32) {
    %c0_i32 = arith.constant 0 : i32
    %c0_i32_0 = arith.constant 0 : i32
    %c0_i32_1 = arith.constant 0 : i32
    return %c0_i32, %c0_i32_0 : i32, i32
  }
  func.func @transform_8(%arg0: i32) -> (i32, i32) {
    %c0_i32 = arith.constant 0 : i32
    %c0_i32_0 = arith.constant 0 : i32
    %c0_i32_1 = arith.constant 0 : i32
    return %c0_i32, %c0_i32_0 : i32, i32
  }
  func.func @transform_9(%arg0: i32) -> (i32, i32) {
    %c0_i32 = arith.constant 0 : i32
    %c0_i32_0 = arith.constant 0 : i32
    %c0_i32_1 = arith.constant 0 : i32
    return %c0_i32, %c0_i32_0 : i32, i32
  }
  func.func @transform_10(%arg0: i32) -> (i32, i32, i32) {
    %c0_i32 = arith.constant 0 : i32
    %c0_i32_0 = arith.constant 0 : i32
    %c0_i32_1 = arith.constant 0 : i32
    return %arg0, %c0_i32, %c0_i32_0 : i32, i32, i32
  }
}

</mosaic_0001>

<bundles_post_ra>
// kernel: tpu_custom_call.1
= control target key start
LH: loop header
LB: loop body
LE: loop exit
PB: predicated region body
PF: predicated region fallthrough
CT: control target
= control target key end

     0   :  { %15 = vsyncpa [#allocation3], 0  ;;  %s2392_s0 = inlined_call_operand.vmem [shape: f32[2,8,32], index: 0, kind: input, shape index: {}]   ;;  %s2393_s1 = inlined_call_operand.vmem [shape: f32[8,32], index: 1, kind: input, shape index: {}]   ;;  %s2394_s2 = inlined_call_operand.vmem [shape: f32[8,32], index: 2, kind: input, shape index: {}]   ;;  %s2395_s3 = inlined_call_operand.vmem [shape: bf16[96,32], index: 3, kind: input, shape index: {}]   ;;  %s2396_s4 = inlined_call_operand.vmem [shape: f32[8,32], index: 4, kind: input, shape index: {}]   ;;  %s2397_s5 = inlined_call_operand.vmem [shape: f32[8,32], index: 5, kind: input, shape index: {}]   ;;  %s2398_s6 = inlined_call_operand.vmem [shape: bf16[32,96], index: 6, kind: input, shape index: {}]   ;;  %s2399_s7 = inlined_call_operand.vmem [shape: f32[1,96], index: 7, kind: input, shape index: {}]   ;;  %s2400_s8 = inlined_call_operand.vmem [shape: bf16[96,32], index: 8, kind: input, shape index: {}]   ;;  %s2401_s9 = inlined_call_operand.vmem [shape: f32[1,32], index: 9, kind: input, shape index: {}]   ;;  %s2402_s10 = inlined_call_operand.hbm [shape: f32[2,8,32], index: 10, kind: output, shape index: {}]  }
   0x1   :  { %17 = vsyncpa [#allocation3 + $0x1], 0  ;;  %s2142_s13 = smov 0   ;;  %s2144_s14 = smov 0  }
   0x2   :  { %s2146_s15 = smov 0   ;;  %s2148_s16 = smov 0  }
   0x3 LB: > { %s2163_s17 = sadd.s32 4294967295, %s2078_s16   ;;  %s1729_s18 = sadd.s32 4294967294, %s2078_s16   ;;  %s2078_s16 = sphi %s2148_s16, %s2408_s16   ;;  %s2074_s15 = sphi %s2146_s15, %s2407_s15   ;;  %s2070_s14 = sphi %s2144_s14, %s2406_s14   ;;  %s2066_s13 = sphi %s2142_s13, %s2405_s13  }
   0x4   : > { %s2167_s19 = sadd.s32 1, %s2078_s16   ;;  %s245_s20 = sadd.s32 1, %s2074_s15 }
   0x5   : > { %s242_s21 = ssub.s32 %s2078_s16, %s2167_s19  ;;  %p255_p0 = scmp.ne.s32.totalorder %s2074_s15, %s2070_s14 }
   0x6   : > { %p243_p1 = scmp.eq.s32.totalorder %s242_s21, 0  ;;  %p256_p2 = scmp.eq.s32.totalorder %s2163_s17, 1 }
   0x7   : > { %p261_p3 = scmp.ne.s32.totalorder %s2070_s14, %s2066_s13  ;;  %p262_p4 = scmp.eq.s32.totalorder %s1729_s18, 1 }
   0x8   : > { %s2178_s22 = scalar_select %p243_p1, %s2074_s15, %s245_s20  }
   0x9   : > { %p2180_p5 = por %p256_p2, %p255_p0  ;;  %p2184_p6 = por %p262_p4, %p261_p3 }
   0xa   : > { %p1732_p7 = scmp.ge.s32.totalorder %s2078_s16, 1  ;;  %p314_p8 = scmp.lt.s32.totalorder %s2078_s16, 3 }
   0xc   : > { %p315_p9 = pnand %p1732_p7, %p314_p8 }
   0xd   : > { %p351_p10 = scmp.lt.s32.totalorder (!%p315_p9), %s2163_s17, 1  ;;  %vm359_vm0 = vcmask (!%p315_p9), 261120   ;;  %v1974_v14 = vld [vmem:[%s2395_s3] sm:$0xff] (!%p315_p9)   ;;  %v1975_v15 = vld [vmem:[%s2395_s3 + $0x10] sm:$0xff] (!%p315_p9)   ;;  %v1976_v34 = vld [vmem:[%s2395_s3 + $0x8] sm:$0xff] (!%p315_p9)   ;;  %v2080_v49 = vmov (!%p315_p9), 0.0  }
   0xe   : > { %318 = sbr.rel (%p315_p9) target bundleno = 2229 (0x8b5), region = 60  ;;  %1806 = vmatprep.mubr.msk.bf16.mxu0 (!%p315_p9), %vm359_vm0, %v1974_v14  ;;  %1810 = vmatprep.mubr.msk.bf16.mxu1 (!%p315_p9), %vm359_vm0, %v1975_v15  ;;  %v357_v27 = vld [vmem:[%s2393_s1] sm:$0xff] (!%p315_p9)  ;;  %v1977_v35 = vld [vmem:[%s2395_s3 + $0x18] sm:$0xff] (!%p315_p9)   ;;  %v1979_v37 = vld [vmem:[%s2395_s3 + $0x28] sm:$0xff] (!%p315_p9)   ;;  %vm2081_vm1 = vmmov (!%p315_p9), 0   ;;  %vm928_vm2 = vcmask (!%p315_p9), 64512  }
   0xf   : > { %v358_v29 = vld [vmem:[%s2394_s2] sm:$0xff] (!%p315_p9)  ;;  %vm1204_vm3 = vcmask (!%p315_p9), 1043456   ;;  %s2082_s21 = smov (!%p315_p9), 8   ;;  %vm1399_vm4 = vcmask (!%p315_p9), 130048   ;;  %vm1401_vm5 = vcmask (!%p315_p9), 195584   ;;  %vm1584_vm7 = vcmask (!%p315_p9), 785408  }
  0x10   : > { %v1978_v36 = vld [vmem:[%s2395_s3 + $0x20] sm:$0xff] (!%p315_p9)   ;;  %s1768_s11 = sshll.u32 (!%p315_p9), %s2163_s17, 7 }
  0x15   : > { %s352_s25 = scalar_select %p351_p10, %s2163_s17, 1 }
  0x16   : > { %s2086_s17 = smov [#allocation2]  }
  0x17   : > { %s1734_s26 = sshll.u32 %s352_s25, 3  ;;  %s2083_s25 = smov 16  }
  0x18   : > { %s354_s29 = scalar_lea.vmem %s2392_s0, %s1734_s26  ;;  %s2084_s26 = smov 24  }
  0x19   : > { %v2195_v0 = vld [vmem:[%s354_s29] sm:$0xff]  ;;  %s348_s29 = sand.u32 1, %s2070_s14   ;;  %s2020_s28 = sshll.u32 %s2086_s17, 4  ;;  %s2021_s28 = int_to_ptr.vmem [resolvable:$false] %s2020_s28 }
  0x1a   : > { %v360_v1 = vsel %vm359_vm0, %v2195_v0, 0.0  ;;  %s1733_s30 = sshll.u32 %s348_s29, 3 }
  0x1b   : > { %361 = vadd.xlane.f32.xlu0 %v360_v1  ;;  %s350_s12 = scalar_lea.vmem [#allocation2], %s1733_s30  ;;  %s2022_s30 = scalar_lea.vmem %s2021_s28, 256 }
  0x1c   : > { %s1670_s18 = sshll.u32 %s350_s12, 4  ;;  %s2351_s18 = int_to_ptr.vmem [resolvable:$true] %s1670_s18 }
  0x1d   : > { %s2016_s27 = scalar_lea.vmem %s2351_s18, 128  ;;  %p2023_p0 = scmp.lt.s32.totalorder %s2351_s18, %s2021_s28 }
  0x1e   : > { %p2017_p11 = scmp.ne.s32.totalorder %s2351_s18, %s2016_s27  ;;  %p2024_p1 = scmp.lt.s32.totalorder %s2022_s30, %s2016_s27 }
  0x20   : > { %p2018_p12 = pnand %p2017_p11, %p2180_p5  ;;  %p2025_p2 = por %p2024_p1, %p2023_p0 }
  0x22   : > { %p2019_p13 = pneg %p2018_p12 }
  0x24   : > { %p2026_p3 = pnand %p2025_p2, %p2019_p13 }
  0xa8   : > { %v362_v2 = vpop.xlane.xlu0 %361 }
  0xa9   : > { %v364_v3 = vmul.f32 0.03125, %v362_v2 }
  0xab   : > { %v365_v4 = vrot.slane %v364_v3, 4 }
  0xad   : > { %v366_v5 = vadd.f32 %v365_v4, %v364_v3 }
  0xaf   : > { %v367_v6 = vrot.slane %v366_v5, 2 }
  0xb1   : > { %v368_v7 = vadd.f32 %v367_v6, %v366_v5 }
  0xb3   : > { %v369_v8 = vrot.slane %v368_v7, 1 }
  0xb5   : > { %v370_v9 = vadd.f32 %v369_v8, %v368_v7 }
  0xb7   : > { %v372_v10 = vmul.f32 0.125, %v370_v9 }
  0xb9   : > { %v373_v11 = vsub.f32 %v2195_v0, %v372_v10 }
  0xbb   : > { %v374_v12 = vmul.f32 %v373_v11, %v373_v11 }
  0xbd   : > { %v375_v13 = vsel %vm359_vm0, %v374_v12, 0.0 }
  0xbe   : > { %376 = vadd.xlane.f32.xlu0 %v375_v13 }
 0x14b   : > { %v377_v16 = vpop.xlane.xlu0 %376 }
 0x14c   : > { %v378_v17 = vmul.f32 0.03125, %v377_v16 }
 0x14e   : > { %v379_v18 = vrot.slane %v378_v17, 4 }
 0x150   : > { %v380_v19 = vadd.f32 %v379_v18, %v378_v17 }
 0x152   : > { %v381_v20 = vrot.slane %v380_v19, 2 }
 0x154   : > { %v382_v21 = vadd.f32 %v381_v20, %v380_v19 }
 0x156   : > { %v383_v22 = vrot.slane %v382_v21, 1 }
 0x158   : > { %v384_v23 = vadd.f32 %v383_v22, %v382_v21 }
 0x15a   : > { %v385_v24 = vmul.f32 0.125, %v384_v23 }
 0x15c   : > { %v386_v25 = vadd.f32 1e-05, %v385_v24 }
 0x15e   : > { %1988 = vrsqrt.f32 %v386_v25 }
 0x168   : > { %v1989_v26 = vpop.eup %1988 }
 0x169   : > { %v388_v28 = vmul.f32 %v1989_v26, %v373_v11 }
 0x16b   : > { %v389_v30 = vmul.f32 %v388_v28, %v357_v27 }
 0x16d   : > { %v390_v31 = vadd.f32 %v389_v30, %v358_v29 }
 0x16f   : > { %v403_v32 = vpack.c.bf16 %v390_v31, %v390_v31 }
 0x171   : > { %1892 = vmatprep.subr.msk.bf16.mxu0 %vm359_vm0, %v403_v32  ;;  %1893 = vmatprep.subr.msk.bf16.mxu1 %vm359_vm0, %v403_v32  ;;  %v453_v33 = vsel %vm359_vm0, %v403_v32, 0 }
 0x172   : > { %1805 = vmatpush3.bf16.xpose.msra.mxu0 %v453_v33  ;;  %1891 = vmatpush3.bf16.xpose.msra.mxu1 %v453_v33 }
 0x173   : > { %1818 = vmatprep.subr.bf16.mxu1 %v2080_v49  ;;  %1836 = vmatprep.subr.bf16.mxu0 %v2080_v49 }
 0x179   : > { %1807 = vmatmul.mubr.msk.bf16.vlgmr.msra.gmra.mrb[0].mxu0 %vm359_vm0, %v1976_v34  ;;  %1811 = vmatmul.mubr.msk.bf16.vlgmr.msra.gmra.mrb[0].mxu1 %vm359_vm0, %v1977_v35 }
 0x17a   : > { %1814 = vmatprep.mubr.msk.bf16.mxu1 %vm359_vm0, %v1978_v36  ;;  %1838 = vmatprep.mubr.msk.bf16.mxu0 %vm2081_vm1, %v2080_v49 }
 0x181   : > { %1815 = vmatmul.mubr.msk.bf16.gmra.mrb[4].mxu1 %vm359_vm0, %v1979_v37 }
 0x182   : > { %1820 = vmatprep.mubr.msk.bf16.mxu1 %vm2081_vm1, %v2080_v49 }
 0x24c   : > { %v1808_v38 = vpop.f32.mrb[0].mxu0  ;;  %v1812_v39 = vpop.f32.mrb[0].mxu1 }
 0x24d   : > { %v489_v40 = vpop.f32.mrb[1].mxu0  ;;  %v505_v41 = vpop.f32.mrb[1].mxu1 }
 0x24e   : > { %664 = vxpose.xlu1.b32.start.end [1/1] (short) (narrow) %v505_v41, 8  ;;  %v1809_v42 = vpop.f32.mrb[2].mxu0  ;;  %v1813_v43 = vpop.f32.mrb[2].mxu1 }
 0x24f   : > { %v1953_v44 = vpack.i.bf16 %v1809_v42, %v1808_v38  ;;  %v492_v45 = vpop.f32.mrb[3].mxu0  ;;  %v508_v46 = vpop.f32.mrb[3].mxu1 }
 0x250   : > { %v1946_v47 = vpack.i.bf16 %v1812_v39, %v492_v45  ;;  %v1939_v48 = vpack.i.bf16 %v508_v46, %v489_v40 }
 0x252   : > { %1940 = vxpose.xlu1.b32.start.end [1/1] (short) (narrow) %v1939_v48, 8  ;;  %1947 = vxpose.xlu0.b32.start.end [1/1] (short) (narrow) %v1946_v47, 8 }
 0x254   : > { %v1816_v50 = vpop.f32.mrb[4].mxu1 }
 0x255   : > { %v521_v51 = vpop.f32.mrb[5].mxu1 }
 0x256   : > { %760 = vxpose.xlu1.b32.start.end [1/1] (short) (narrow) %v1813_v43, 8  ;;  %v1817_v52 = vpop.f32.mrb[6].mxu1 }
 0x257   : > { %v1967_v53 = vpack.i.bf16 %v1817_v52, %v1816_v50  ;;  %v524_v54 = vpop.f32.mrb[7].mxu1 }
 0x258   : > { %v1960_v55 = vpack.i.bf16 %v524_v54, %v521_v51 }
 0x25a   : > { %1954 = vxpose.xlu1.b32.start.end [1/1] (short) (narrow) %v1953_v44, 8 }
 0x25e   : > { %1961 = vxpose.xlu1.b32.start.end [1/1] (short) (narrow) %v1960_v55, 8 }
 0x262   : > { %1968 = vxpose.xlu1.b32.start.end [1/1] (short) (narrow) %v1967_v53, 8 }
 0x2ce   : > { %v680_v56 = vpop.trf.xlu1 }
 0x2cf   : > { %v924_v57 = vpack.c.bf16 %v680_v56, %v680_v56 }
 0x2d1   : > { %v933_v58 = vsel %vm928_vm2, %v924_v57, 0 }
 0x2d2   : > { %1819 = vmatpush3.bf16.xpose.msra.mxu1 %v933_v58  ;;  %v1941_v59 = vpop.trf.xlu1  ;;  %v1948_v60 = vpop.trf.xlu0 }
 0x2d3   : > { %v1945_v61 = vunpack.i.h.bf16 %v1941_v59  ;;  %v1942_v62 = vunpack.i.l.bf16 %v1941_v59  ;;  %1824 = vmatprep.subr.bf16.mxu1 %v2080_v49  ;;  %v1952_v5 = vunpack.i.h.bf16 %v1948_v60  ;;  %v1949_v7 = vunpack.i.l.bf16 %v1948_v60 }
 0x2d5   : > { %v920_v63 = vpack.c.bf16 %v1942_v62, %v1942_v62  ;;  %v925_v1 = vpack.c.bf16 %v1945_v61, %v1945_v61  ;;  %v926_v10 = vpack.c.bf16 %v1952_v5, %v1952_v5  ;;  %v921_v12 = vpack.c.bf16 %v1949_v7, %v1949_v7 }
 0x2d6   : > { %v776_v2 = vpop.trf.xlu1 }
 0x2d7   : > { %v927_v3 = vpack.c.bf16 %v776_v2, %v776_v2  ;;  %v979_v4 = vsel %vm928_vm2, %v925_v1, 0  ;;  %v1025_v13 = vsel %vm928_vm2, %v926_v10, 0 }
 0x2d9   : > { %v1071_v6 = vsel %vm928_vm2, %v927_v3, 0  ;;  %1821 = vmatmul.mubr.msk.bf16.vlgmr.msra.gmra.mrb[8].mxu1 %vm928_vm2, %v920_v63 }
 0x2da   : > { %1825 = vmatpush3.bf16.xpose.msra.mxu1 %v979_v4  ;;  %1837 = vmatpush3.bf16.xpose.msra.mxu0 %v1071_v6  ;;  %v1955_v8 = vpop.trf.xlu1 }
 0x2db   : > { %v1959_v9 = vunpack.i.h.bf16 %v1955_v8  ;;  %1826 = vmatprep.mubr.msk.bf16.mxu1 %vm2081_vm1, %v2080_v49  ;;  %1830 = vmatprep.subr.bf16.mxu1 %v2080_v49  ;;  %v1956_v14 = vunpack.i.l.bf16 %v1955_v8 }
 0x2dc   : > { %1848 = vmatprep.subr.bf16.mxu0 %v2080_v49 }
 0x2dd   : > { %v923_v11 = vpack.c.bf16 %v1959_v9, %v1959_v9  ;;  %v922_v15 = vpack.c.bf16 %v1956_v14, %v1956_v14 }
 0x2de   : > { %v1962_v16 = vpop.trf.xlu1 }
 0x2df   : > { %v1963_v17 = vunpack.i.l.bf16 %v1962_v16  ;;  %v1966_v20 = vunpack.i.h.bf16 %v1962_v16 }
 0x2e1   : > { %1827 = vmatmul.mubr.msk.bf16.vlgmr.msra.gmra.mrb[12].mxu1 %vm928_vm2, %v921_v12  ;;  %1839 = vmatmul.mubr.msk.bf16.vlgmr.msra.gmra.mrb[4].mxu0 %vm928_vm2, %v923_v11  ;;  %v1197_v18 = vpack.c.bf16 %v1963_v17, %v1963_v17  ;;  %v1198_v22 = vpack.c.bf16 %v1966_v20, %v1966_v20 }
 0x2e2   : > { %1831 = vmatpush3.bf16.xpose.msra.mxu1 %v1025_v13  ;;  %1832 = vmatprep.mubr.msk.bf16.mxu1 %vm2081_vm1, %v2080_v49  ;;  %v2262_v21 = vpop.trf.xlu1 }
 0x2e3   : > { %1842 = vmatprep.subr.bf16.mxu1 %v2080_v49  ;;  %1850 = vmatprep.mubr.msk.bf16.mxu0 %vm2081_vm1, %v2080_v49  ;;  %v1206_v19 = vsel %vm1204_vm3, %v1197_v18, 0  ;;  %v1252_v23 = vsel %vm1204_vm3, %v1198_v22, 0 }
 0x2e4   : > { %1849 = vmatpush3.bf16.msra.mxu0 %v1252_v23 }
 0x2e5   : > { %1860 = vmatprep.subr.bf16.mxu0 %v2080_v49 }
 0x2e9   : > { %1833 = vmatmul.mubr.msk.bf16.vlgmr.msra.gmra.mrb[16].mxu1 %vm928_vm2, %v922_v15 }
 0x2ea   : > { %1844 = vmatprep.mubr.msk.bf16.mxu1 %vm2081_vm1, %v2080_v49  ;;  %1843 = vmatpush3.bf16.msra.mxu1 %v1206_v19 }
 0x2eb   : > { %1854 = vmatprep.subr.bf16.mxu1 %v2080_v49 }
 0x3ac   : > { %v969_v24 = vpop.f32.mrb[8].mxu1 }
 0x3ad   : > { %v1113_v25 = vmul.f32 0.35355338, %v969_v24  ;;  %v1822_v26 = vpop.f32.mrb[9].mxu1 }
 0x3ae   : > { %v972_v27 = vpop.f32.mrb[10].mxu1 }
 0x3af   : > { %v1117_v28 = vsel %vm928_vm2, %v1113_v25, -inf  ;;  %v1823_v29 = vpop.f32.mrb[11].mxu1 }
 0x3b0   : > { %v1118_v30 = vrot.slane %v1117_v28, 4 }
 0x3b2   : > { %v1119_v31 = vmax.f32 %v1117_v28, %v1118_v30 }
 0x3b4   : > { %v1120_v32 = vrot.slane %v1119_v31, 2  ;;  %v1015_v33 = vpop.f32.mrb[12].mxu1  ;;  %v1107_v34 = vpop.f32.mrb[4].mxu0 }
 0x3b5   : > { %v1114_v35 = vmul.f32 0.35355338, %v1015_v33  ;;  %v1116_v36 = vmul.f32 0.35355338, %v1107_v34  ;;  %v1828_v37 = vpop.f32.mrb[13].mxu1  ;;  %v1840_v38 = vpop.f32.mrb[5].mxu0 }
 0x3b6   : > { %v1121_v39 = vmax.f32 %v1119_v31, %v1120_v32  ;;  %v1018_v40 = vpop.f32.mrb[14].mxu1  ;;  %v1110_v41 = vpop.f32.mrb[6].mxu0 }
 0x3b7   : > { %v1124_v42 = vsel %vm928_vm2, %v1114_v35, -inf  ;;  %v1138_v43 = vsel %vm928_vm2, %v1116_v36, -inf  ;;  %v1829_v44 = vpop.f32.mrb[15].mxu1  ;;  %v1841_v45 = vpop.f32.mrb[7].mxu0 }
 0x3b8   : > { %v1122_v46 = vrot.slane %v1121_v39, 1  ;;  %v1125_v47 = vrot.slane %v1124_v42, 4  ;;  %v1139_v48 = vrot.slane %v1138_v43, 4  ;;  %v1970_v44 = vunpack.i.l.bf16 %v2262_v21 }
 0x3ba   : > { %v1123_v50 = vmax.f32 %v1121_v39, %v1122_v46  ;;  %v1126_v51 = vmax.f32 %v1124_v42, %v1125_v47  ;;  %v1140_v52 = vmax.f32 %v1138_v43, %v1139_v48 }
 0x3bc   : > { %v1145_v53 = vsub.f32 %v1113_v25, %v1123_v50  ;;  %v1127_v54 = vrot.slane %v1126_v51, 2  ;;  %v1141_v55 = vrot.slane %v1140_v52, 2  ;;  %v1061_v56 = vpop.f32.mrb[16].mxu1  ;;  %v1199_v50 = vpack.c.bf16 %v1970_v44, %v1970_v44 }
 0x3bd   : > { %v1115_v57 = vmul.f32 0.35355338, %v1061_v56  ;;  %v1834_v58 = vpop.f32.mrb[17].mxu1  ;;  %v1973_v56 = vunpack.i.h.bf16 %v2262_v21 }
 0x3be   : > { %v1149_v59 = vmul.f32 1.442695, %v1145_v53  ;;  %v1128_v60 = vmax.f32 %v1126_v51, %v1127_v54  ;;  %v1142_v61 = vmax.f32 %v1140_v52, %v1141_v55  ;;  %v1064_v62 = vpop.f32.mrb[18].mxu1 }
 0x3bf   : > { %v1131_v63 = vsel %vm928_vm2, %v1115_v57, -inf  ;;  %v1835_v1 = vpop.f32.mrb[19].mxu1 }
 0x3c0   : > { %1990 = vpow2.f32 %v1149_v59  ;;  %v1129_v2 = vrot.slane %v1128_v60, 1  ;;  %v1143_v3 = vrot.slane %v1142_v61, 1  ;;  %v1132_v4 = vrot.slane %v1131_v63, 4 }
 0x3c1   : > { %v1200_v59 = vpack.c.bf16 %v1973_v56, %v1973_v56  ;;  %v1404_v56 = vld [vmem:[%s2396_s4] sm:$0xff] }
 0x3c2   : > { %v1130_v5 = vmax.f32 %v1128_v60, %v1129_v2  ;;  %v1144_v6 = vmax.f32 %v1142_v61, %v1143_v3  ;;  %v1133_v7 = vmax.f32 %v1131_v63, %v1132_v4 }
 0x3c3   : > { %v1344_v63 = vsel %vm1204_vm3, %v1200_v59, 0 }
 0x3c4   : > { %v1146_v8 = vsub.f32 %v1114_v35, %v1130_v5  ;;  %v1148_v9 = vsub.f32 %v1116_v36, %v1144_v6  ;;  %v1134_v10 = vrot.slane %v1133_v7, 2 }
 0x3c6   : > { %v1151_v11 = vmul.f32 1.442695, %v1146_v8  ;;  %v1155_v12 = vmul.f32 1.442695, %v1148_v9  ;;  %v1135_v13 = vmax.f32 %v1133_v7, %v1134_v10 }
 0x3c8   : > { %1992 = vpow2.f32 %v1151_v11  ;;  %v1136_v14 = vrot.slane %v1135_v13, 1 }
 0x3c9   : > { %1994 = vpow2.f32 %v1155_v12 }
 0x3ca   : > { %v1991_v15 = vpop.eup %1990  ;;  %v1137_v16 = vmax.f32 %v1135_v13, %v1136_v14 }
 0x3cb   : > { %v1157_v17 = vsel %vm928_vm2, %v1991_v15, 0.0 }
 0x3cc   : > { %v1158_v18 = vrot.slane %v1157_v17, 4  ;;  %v1147_v19 = vsub.f32 %v1115_v57, %v1137_v16  ;;  %v1298_v57 = vsel %vm1204_vm3, %v1199_v50, 0 }
 0x3ce   : > { %v1159_v20 = vadd.f32 %v1158_v18, %v1157_v17  ;;  %v1153_v22 = vmul.f32 1.442695, %v1147_v19 }
 0x3d0   : > { %v1160_v23 = vrot.slane %v1159_v20, 2  ;;  %1996 = vpow2.f32 %v1153_v22 }
 0x3d2   : > { %v1993_v24 = vpop.eup %1992  ;;  %v1161_v25 = vadd.f32 %v1160_v23, %v1159_v20 }
 0x3d3   : > { %v1995_v26 = vpop.eup %1994  ;;  %v1164_v27 = vsel %vm928_vm2, %v1993_v24, 0.0 }
 0x3d4   : > { %v1162_v28 = vrot.slane %v1161_v25, 1  ;;  %v1165_v29 = vrot.slane %v1164_v27, 4  ;;  %v1178_v30 = vsel %vm928_vm2, %v1995_v26, 0.0 }
 0x3d5   : > { %v1179_v31 = vrot.slane %v1178_v30, 4 }
 0x3d6   : > { %v1163_v32 = vadd.f32 %v1162_v28, %v1161_v25  ;;  %v1166_v33 = vadd.f32 %v1165_v29, %v1164_v27 }
 0x3d7   : > { %v1180_v34 = vadd.f32 %v1179_v31, %v1178_v30 }
 0x3d8   : > { %1998 = vrcp.f32 %v1163_v32  ;;  %v1167_v35 = vrot.slane %v1166_v33, 2 }
 0x3d9   : > { %v1181_v36 = vrot.slane %v1180_v34, 2 }
 0x3da   : > { %v1997_v37 = vpop.eup %1996  ;;  %v1168_v38 = vadd.f32 %v1167_v35, %v1166_v33 }
 0x3db   : > { %v1182_v39 = vadd.f32 %v1181_v36, %v1180_v34  ;;  %v1171_v40 = vsel %vm928_vm2, %v1997_v37, 0.0 }
 0x3dc   : > { %v1169_v41 = vrot.slane %v1168_v38, 1  ;;  %v1172_v42 = vrot.slane %v1171_v40, 4 }
 0x3dd   : > { %v1183_v43 = vrot.slane %v1182_v39, 1 }
 0x3de   : > { %v1170_v45 = vadd.f32 %v1169_v41, %v1168_v38  ;;  %v1173_v46 = vadd.f32 %v1172_v42, %v1171_v40 }
 0x3df   : > { %v1184_v47 = vadd.f32 %v1183_v43, %v1182_v39  ;;  %v1981_v43 = vld [vmem:[%s2398_s6 + $0x8] sm:$0xff]  }
 0x3e0   : > { %2000 = vrcp.f32 %v1170_v45  ;;  %v1174_v48 = vrot.slane %v1173_v46, 2 }
 0x3e1   : > { %2002 = vrcp.f32 %v1184_v47 }
 0x3e2   : > { %v1999_v51 = vpop.eup %1998  ;;  %v1175_v52 = vadd.f32 %v1174_v48, %v1173_v46 }
 0x3e3   : > { %v1189_v53 = vmul.f32 %v1999_v51, %v1991_v15 }
 0x3e4   : > { %v1176_v54 = vrot.slane %v1175_v52, 1 }
 0x3e5   : > { %v1193_v55 = vpack.c.bf16 %v1189_v53, %v1189_v53 }
 0x3e6   : > { %v1177_v58 = vadd.f32 %v1176_v54, %v1175_v52 }
 0x3e7   : > { %1845 = vmatmul.mubr.msk.bf16.vlgmr.msra.gmra.mrb[20].mxu1 %vm928_vm2, %v1193_v55 }
 0x3e8   : > { %2004 = vrcp.f32 %v1177_v58  ;;  %1855 = vmatpush3.bf16.msra.mxu1 %v1298_v57  ;;  %1856 = vmatprep.mubr.msk.bf16.mxu1 %vm2081_vm1, %v2080_v49  ;;  %v1405_v58 = vld [vmem:[%s2397_s5] sm:$0xff] }
 0x3e9   : > { %1866 = vmatprep.subr.bf16.mxu1 %v2080_v49 }
 0x3ea   : > { %v2001_v60 = vpop.eup %2000 }
 0x3eb   : > { %v1190_v61 = vmul.f32 %v2001_v60, %v1993_v24  ;;  %v2003_v1 = vpop.eup %2002 }
 0x3ec   : > { %v1192_v21 = vmul.f32 %v2003_v1, %v1995_v26  ;;  %v1984_v1 = vld [vmem:[%s2400_s8 + $0x10] sm:$0xff]  }
 0x3ed   : > { %v1194_v62 = vpack.c.bf16 %v1190_v61, %v1190_v61 }
 0x3ee   : > { %v1196_v5 = vpack.c.bf16 %v1192_v21, %v1192_v21  ;;  %v1985_v21 = vld [vmem:[%s2400_s8 + $0x18] sm:$0xff]  }
 0x3ef   : > { %1851 = vmatmul.mubr.msk.bf16.vlgmr.msra.gmra.mrb[8].mxu0 %vm928_vm2, %v1194_v62  ;;  %v1982_v62 = vld [vmem:[%s2400_s8] sm:$0xff]  }
 0x3f0   : > { %1861 = vmatpush3.bf16.msra.mxu0 %v1344_v63  ;;  %1862 = vmatprep.mubr.msk.bf16.mxu0 %vm2081_vm1, %v2080_v49  ;;  %v1983_v63 = vld [vmem:[%s2400_s8 + $0x8] sm:$0xff]  }
 0x3f1   : > { %1874 = vmatprep.subr.bf16.mxu0 %v2080_v49 }
 0x3f2   : > { %v2005_v2 = vpop.eup %2004 }
 0x3f3   : > { %v1191_v3 = vmul.f32 %v2005_v2, %v1997_v37  ;;  %v1986_v2 = vld [vmem:[%s2400_s8 + $0x20] sm:$0xff]  }
 0x3f5   : > { %v1195_v4 = vpack.c.bf16 %v1191_v3, %v1191_v3  ;;  %v1987_v3 = vld [vmem:[%s2400_s8 + $0x28] sm:$0xff]  }
 0x3f7   : > { %1857 = vmatmul.mubr.msk.bf16.vlgmr.msra.gmra.mrb[24].mxu1 %vm928_vm2, %v1195_v4  ;;  %1863 = vmatmul.mubr.msk.bf16.vlgmr.msra.gmra.mrb[12].mxu0 %vm928_vm2, %v1196_v5  ;;  %v1755_v4 = vld [vmem:[%s2399_s7] ss:$0 sm:$0xff] }
 0x3f8   : > { %1870 = vmatprep.mubr.msk.bf16.mxu1 %vm2081_vm1, %v2080_v49  ;;  %1886 = vmatprep.mubr.msk.bf16.mxu0 %vm2081_vm1, %v2080_v49 }
 0x3f9   : > { %1875 = vmatpush3.bf16.msra.mxu0 %v1982_v62 }
 0x3fa   : > { %1876 = vmatprep.subr.bf16.mxu0 %v2080_v49 }
 0x3fd   : > { %1877 = vmatpush3.bf16.msra.mxu0 %v1983_v63 }
 0x3fe   : > { %1878 = vmatprep.subr.bf16.mxu0 %v2080_v49 }
 0x401   : > { %1879 = vmatpush3.bf16.msra.mxu0 %v1984_v1 }
 0x402   : > { %1880 = vmatprep.subr.bf16.mxu0 %v2080_v49 }
 0x405   : > { %1881 = vmatpush3.bf16.msra.mxu0 %v1985_v21 }
 0x406   : > { %1882 = vmatprep.subr.bf16.mxu0 %v2080_v49 }
 0x409   : > { %1883 = vmatpush3.bf16.msra.mxu0 %v1986_v2 }
 0x40a   : > { %1884 = vmatprep.subr.bf16.mxu0 %v2080_v49 }
 0x40d   : > { %1885 = vmatpush3.bf16.msra.mxu0 %v1987_v3 }
 0x4ba   : > { %v1242_v6 = vpop.f32.mrb[20].mxu1 }
 0x4bb   : > { %v1846_v7 = vpop.f32.mrb[21].mxu1 }
 0x4bc   : > { %v1245_v8 = vpop.f32.mrb[22].mxu1 }
 0x4bd   : > { %v1847_v9 = vpop.f32.mrb[23].mxu1 }
 0x4c2   : > { %v1288_v10 = vpop.f32.mrb[8].mxu0 }
 0x4c3   : > { %1387 = vrot.lane.b32.xlu1 %v1288_v10, %s2082_s21  ;;  %v1852_v11 = vpop.f32.mrb[9].mxu0 }
 0x4c4   : > { %v1291_v12 = vpop.f32.mrb[10].mxu0 }
 0x4c5   : > { %v1853_v13 = vpop.f32.mrb[11].mxu0 }
 0x4ca   : > { %v1334_v14 = vpop.f32.mrb[24].mxu1  ;;  %v1380_v15 = vpop.f32.mrb[12].mxu0 }
 0x4cb   : > { %1391 = vrot.lane.b32.xlu0 %v1334_v14, %s2083_s25  ;;  %v1858_v16 = vpop.f32.mrb[25].mxu1  ;;  %1395 = vrot.lane.b32.xlu1 %v1380_v15, %s2084_s26  ;;  %v1864_v17 = vpop.f32.mrb[13].mxu0  ;;  %s2349_s25 = scalar_lea.hbm %s2402_s10, %s1768_s11  ;;  %s1657_s26 = scalar_lea.sflag [#allocation3], %s348_s29 }
 0x4cc   : > { %v1337_v18 = vpop.f32.mrb[26].mxu1  ;;  %v1383_v19 = vpop.f32.mrb[14].mxu0 }
 0x4cd   : > { %v1859_v20 = vpop.f32.mrb[27].mxu1  ;;  %v1865_v22 = vpop.f32.mrb[15].mxu0 }
 0x535   : > { %v1388_v23 = vpop.permute.xlu1 %1387 }
 0x536   : > { %v1398_v24 = vsel %vm928_vm2, %v1242_v6, %v1388_v23 }
 0x53d   : > { %v1392_v25 = vpop.permute.xlu0 %1391  ;;  %v1396_v26 = vpop.permute.xlu1 %1395 }
 0x53e   : > { %v1400_v27 = vsel %vm1399_vm4, %v1398_v24, %v1392_v25 }
 0x53f   : > { %v1402_v28 = vsel %vm1401_vm5, %v1400_v27, %v1396_v26 }
 0x540   : > { %v2294_v29 = vadd.f32 %v1402_v28, %v2195_v0  ;;  %v1980_v0 = vld [vmem:[%s2398_s6] sm:$0xff]  }
 0x541   : > { %1867 = vmatpush3.bf16.msra.mxu1 %v1980_v0 }
 0x542   : > { %v1406_v30 = vsel %vm359_vm0, %v2294_v29, 0.0  ;;  %1868 = vmatprep.subr.bf16.mxu1 %v2080_v49 }
 0x543   : > { %1407 = vadd.xlane.f32.xlu1 %v1406_v30 }
 0x545   : > { %1869 = vmatpush3.bf16.msra.mxu1 %v1981_v43 }
 0x5d0   : > { %v1408_v31 = vpop.xlane.xlu1 %1407 }
 0x5d1   : > { %v1409_v32 = vmul.f32 0.03125, %v1408_v31  ;;  %v2085_v31 = vmov -1.0  }
 0x5d3   : > { %v1410_v33 = vrot.slane %v1409_v32, 4 }
 0x5d5   : > { %v1411_v34 = vadd.f32 %v1410_v33, %v1409_v32 }
 0x5d7   : > { %v1412_v35 = vrot.slane %v1411_v34, 2 }
 0x5d9   : > { %v1413_v36 = vadd.f32 %v1412_v35, %v1411_v34 }
 0x5db   : > { %v1414_v37 = vrot.slane %v1413_v36, 1 }
 0x5dd   : > { %v1415_v38 = vadd.f32 %v1414_v37, %v1413_v36 }
 0x5df   : > { %v1416_v39 = vmul.f32 0.125, %v1415_v38  ;;  %v1759_v38 = vld [vmem:[%s2401_s9] ss:$0 sm:$0xff] }
 0x5e1   : > { %v1417_v40 = vsub.f32 %v2294_v29, %v1416_v39 }
 0x5e3   : > { %v1418_v41 = vmul.f32 %v1417_v40, %v1417_v40 }
 0x5e5   : > { %v1419_v42 = vsel %vm359_vm0, %v1418_v41, 0.0 }
 0x5e6   : > { %1420 = vadd.xlane.f32.xlu0 %v1419_v42 }
 0x673   : > { %v1421_v44 = vpop.xlane.xlu0 %1420 }
 0x674   : > { %v1422_v45 = vmul.f32 0.03125, %v1421_v44 }
 0x676   : > { %v1423_v46 = vrot.slane %v1422_v45, 4 }
 0x678   : > { %v1424_v47 = vadd.f32 %v1423_v46, %v1422_v45 }
 0x67a   : > { %v1425_v48 = vrot.slane %v1424_v47, 2 }
 0x67c   : > { %v1426_v50 = vadd.f32 %v1425_v48, %v1424_v47 }
 0x67e   : > { %v1427_v51 = vrot.slane %v1426_v50, 1 }
 0x680   : > { %v1428_v52 = vadd.f32 %v1427_v51, %v1426_v50 }
 0x682   : > { %v1429_v53 = vmul.f32 0.125, %v1428_v52 }
 0x684   : > { %v1430_v54 = vadd.f32 1e-05, %v1429_v53 }
 0x686   : > { %2006 = vrsqrt.f32 %v1430_v54 }
 0x690   : > { %v2007_v55 = vpop.eup %2006 }
 0x691   : > { %v1432_v57 = vmul.f32 %v2007_v55, %v1417_v40 }
 0x693   : > { %v1433_v59 = vmul.f32 %v1432_v57, %v1404_v56 }
 0x695   : > { %v1434_v60 = vadd.f32 %v1433_v59, %v1405_v58 }
 0x697   : > { %v1435_v61 = vpack.c.bf16 %v1434_v60, %v1434_v60 }
 0x699   : > { %1871 = vmatmul.mubr.msk.bf16.vlgmr.msra.gmra.mrb[28].mxu1 %vm359_vm0, %v1435_v61 }
 0x76c   : > { %v1496_v5 = vpop.f32.mrb[28].mxu1 }
 0x76d   : > { %v1497_v6 = vadd.f32 %v1755_v4, %v1496_v5  ;;  %v1872_v7 = vpop.f32.mrb[29].mxu1 }
 0x76e   : > { %v1499_v8 = vpop.f32.mrb[30].mxu1 }
 0x76f   : > { %v1503_v9 = vmul.f32 0.70710677, %v1497_v6  ;;  %v1873_v10 = vpop.f32.mrb[31].mxu1  ;;  %v1502_v34 = vmul.f32 0.5, %v1497_v6 }
 0x771   : > { %v1506_v11 = vand.u32 2147483647, %v1503_v9  ;;  %vm1504_vm6 = vcmp.ge.f32.partialorder %v1503_v9, 0.0 }
 0x772   : > { %v1505_v32 = vsel %vm1504_vm6, 1.0, %v2085_v31 }
 0x773   : > { %v1507_v12 = vmul.f32 0.3275911, %v1506_v11  ;;  %v1519_v49 = vsub.f32 0.0, %v1506_v11 }
 0x775   : > { %v1508_v13 = vadd.f32 1.0, %v1507_v12  ;;  %v1520_v15 = vmul.f32 %v1519_v49, %v1506_v11 }
 0x777   : > { %2008 = vrcp.f32 %v1508_v13  ;;  %v1521_v18 = vmul.f32 1.442695, %v1520_v15 }
 0x779   : > { %2010 = vpow2.f32 %v1521_v18 }
 0x781   : > { %v2009_v14 = vpop.eup %2008 }
 0x782   : > { %v1510_v16 = vmul.f32 1.0614054, %v2009_v14 }
 0x783   : > { %v2011_v27 = vpop.eup %2010 }
 0x784   : > { %v1511_v17 = vadd.f32 -1.4531521, %v1510_v16 }
 0x786   : > { %v1512_v19 = vmul.f32 %v2009_v14, %v1511_v17 }
 0x788   : > { %v1513_v20 = vadd.f32 1.4214138, %v1512_v19 }
 0x78a   : > { %v1514_v22 = vmul.f32 %v2009_v14, %v1513_v20 }
 0x78c   : > { %v1515_v23 = vadd.f32 -0.28449672, %v1514_v22 }
 0x78e   : > { %v1516_v24 = vmul.f32 %v2009_v14, %v1515_v23 }
 0x790   : > { %v1517_v25 = vadd.f32 0.2548296, %v1516_v24 }
 0x792   : > { %v1518_v26 = vmul.f32 %v2009_v14, %v1517_v25 }
 0x794   : > { %v1523_v28 = vmul.f32 %v2011_v27, %v1518_v26 }
 0x796   : > { %v1524_v30 = vsub.f32 1.0, %v1523_v28 }
 0x798   : > { %v1525_v33 = vmul.f32 %v1524_v30, %v1505_v32 }
 0x79a   : > { %v1526_v35 = vadd.f32 1.0, %v1525_v33 }
 0x79c   : > { %v1527_v36 = vmul.f32 %v1526_v35, %v1502_v34 }
 0x79e   : > { %v1528_v37 = vpack.c.bf16 %v1527_v36, %v1527_v36 }
 0x7a0   : > { %1887 = vmatmul.mubr.msk.bf16.vlgmr.msra.gmra.mrb[16].mxu0 %vm1584_vm7, %v1528_v37 }
 0x873   : > { %v1622_v39 = vpop.f32.mrb[16].mxu0 }
 0x874   : > { %v1623_v40 = vadd.f32 %v1759_v38, %v1622_v39  ;;  %v1888_v41 = vpop.f32.mrb[17].mxu0 }
 0x875   : > { %v1625_v42 = vpop.f32.mrb[18].mxu0 }
 0x876   : > { %v1629_v0 = vmul.f32 0.70710677, %v1623_v40  ;;  %v1889_v43 = vpop.f32.mrb[19].mxu0  ;;  %v1628_v2 = vmul.f32 0.5, %v1623_v40 }
 0x878   : > { %v1632_v44 = vand.u32 2147483647, %v1629_v0  ;;  %vm1630_vm8 = vcmp.ge.f32.partialorder %v1629_v0, 0.0 }
 0x879   : > { %v1631_v1 = vsel %vm1630_vm8, 1.0, %v2085_v31 }
 0x87a   : > { %v1633_v45 = vmul.f32 0.3275911, %v1632_v44  ;;  %v1645_v47 = vsub.f32 0.0, %v1632_v44 }
 0x87c   : > { %v1634_v46 = vadd.f32 1.0, %v1633_v45  ;;  %v1646_v50 = vmul.f32 %v1645_v47, %v1632_v44 }
 0x87e   : > { %2012 = vrcp.f32 %v1634_v46  ;;  %v1647_v53 = vmul.f32 1.442695, %v1646_v50 }
 0x880   : > { %2014 = vpow2.f32 %v1647_v53 }
 0x888   : > { %v2013_v48 = vpop.eup %2012 }
 0x889   : > { %v1636_v51 = vmul.f32 1.0614054, %v2013_v48 }
 0x88a   : > { %v2015_v61 = vpop.eup %2014 }
 0x88b   : > { %v1637_v52 = vadd.f32 -1.4531521, %v1636_v51 }
 0x88d   : > { %v1638_v54 = vmul.f32 %v2013_v48, %v1637_v52 }
 0x88f   : > { %v1639_v55 = vadd.f32 1.4214138, %v1638_v54 }
 0x891   : > { %v1640_v56 = vmul.f32 %v2013_v48, %v1639_v55 }
 0x893   : > { %v1641_v57 = vadd.f32 -0.28449672, %v1640_v56 }
 0x895   : > { %v1642_v58 = vmul.f32 %v2013_v48, %v1641_v57 }
 0x897   : > { %v1643_v59 = vadd.f32 0.2548296, %v1642_v58 }
 0x899   : > { %v1644_v60 = vmul.f32 %v2013_v48, %v1643_v59 }
 0x89b   : > { %v1649_v62 = vmul.f32 %v2015_v61, %v1644_v60 }
 0x89d   : > { %v1650_v63 = vsub.f32 1.0, %v1649_v62 }
 0x89f   : > { %v1651_v21 = vmul.f32 %v1650_v63, %v1631_v1 }
 0x8a1   : > { %v1652_v3 = vadd.f32 1.0, %v1651_v21 }
 0x8a3   : > { %v1653_v4 = vmul.f32 %v1652_v3, %v1628_v2 }
 0x8a5   : > { %v1654_v5 = vadd.f32 %v1653_v4, %v2294_v29 }
 0x8a7   : > { %1655 = vst.msk [vmem:[%s350_s12] sm:$0xff] %vm359_vm0, %v1654_v5 }
 0x8a8   : > { %2029 = shalt.err (!%p2026_p3)
}
 0x8a9   : > { %s2030_s29 = scalar_lea.hbm %s2349_s25, 128  ;;  %s2034_s20 = scalar_lea.hbm %s2402_s10, 256 }
 0x8aa   : > { %p2031_p4 = scmp.ne.s32.totalorder %s2349_s25, %s2030_s29  ;;  %p2035_p9 = scmp.lt.u32.totalorder %s2349_s25, %s2402_s10 }
 0x8ab   : > { %p2036_p10 = scmp.lt.u32.totalorder %s2034_s20, %s2030_s29  ;;  %p2038_p12 = scmp.lt.u32.totalorder %s2030_s29, %s2349_s25 }
 0x8ac   : > { %p2032_p7 = pnand %p2031_p4, %p2180_p5 }
 0x8ad   : > { %p2037_p11 = por %p2036_p10, %p2035_p9 }
 0x8ae   : > { %p2033_p8 = pneg %p2032_p7 }
 0x8af   : > { %p2039_p13 = por %p2038_p12, %p2037_p11 }
 0x8b1   : > { %p2040_p0 = pnand %p2039_p13, %p2033_p8 }
 0x8b3   : > { %2043 = shalt.err (!%p2040_p0)
}
 0x8b4   : > { %1894 = dma.vmem_to_hbm [thread:$0]  (%p2180_p5), %s2351_s18, 128, %s2349_s25, %s1657_s26  }
 0x8b5 PF: > { %p1900_p1 = scmp.ge.s32.totalorder %s2078_s16, 2  ;;  %s1682_s27 = sand.u32 1, %s2066_s13  }
 0x8b6   : > { %s1683_s28 = scalar_lea.sflag [#allocation3], %s1682_s27 }
 0x8b7   : > { %p1897_p2 = pnand %p1900_p1, %p2184_p6 }
 0x8b9   : > { %2061 = dma.done.wait (!%p1897_p2), %s1683_s28, 128  }
 0x8ba   : > { %2063 = vsyncadd (!%p1897_p2), %s1683_s28, 4294967168  ;;  %p20_p3 = scmp.ge.s32.totalorder %s2167_s19, 4   ;;  %s2405_s13 = smov %s2070_s14 }
 0x8bb   : > { %s2406_s14 = smov %s2074_s15  ;;  %s2407_s15 = smov %s2178_s22 }
 0x8bc   : > { %s2408_s16 = smov %s2167_s19  ;;  %22 = sbr.rel (!%p20_p3) target bundleno = 3 (0x3), region = 95 }
 0x8c3   :  { %1688 = vsyncpa [#allocation3], 1 }
 0x8c4   :  { %1690 = vsyncpa [#allocation3 + $0x1], 1 }

// kernel: tpu_custom_call.1
= control target key start
LH: loop header
LB: loop body
LE: loop exit
PB: predicated region body
PF: predicated region fallthrough
CT: control target
= control target key end

     0   :  { %15 = vsyncpa [#allocation3], 0  ;;  %s2392_s0 = inlined_call_operand.vmem [shape: f32[2,8,32], index: 0, kind: input, shape index: {}]   ;;  %s2393_s1 = inlined_call_operand.vmem [shape: f32[8,32], index: 1, kind: input, shape index: {}]   ;;  %s2394_s2 = inlined_call_operand.vmem [shape: f32[8,32], index: 2, kind: input, shape index: {}]   ;;  %s2395_s3 = inlined_call_operand.vmem [shape: bf16[96,32], index: 3, kind: input, shape index: {}]   ;;  %s2396_s4 = inlined_call_operand.vmem [shape: f32[8,32], index: 4, kind: input, shape index: {}]   ;;  %s2397_s5 = inlined_call_operand.vmem [shape: f32[8,32], index: 5, kind: input, shape index: {}]   ;;  %s2398_s6 = inlined_call_operand.vmem [shape: bf16[32,96], index: 6, kind: input, shape index: {}]   ;;  %s2399_s7 = inlined_call_operand.vmem [shape: f32[1,96], index: 7, kind: input, shape index: {}]   ;;  %s2400_s8 = inlined_call_operand.vmem [shape: bf16[96,32], index: 8, kind: input, shape index: {}]   ;;  %s2401_s9 = inlined_call_operand.vmem [shape: f32[1,32], index: 9, kind: input, shape index: {}]   ;;  %s2402_s10 = inlined_call_operand.hbm [shape: f32[2,8,32], index: 10, kind: output, shape index: {}]  }
   0x1   :  { %17 = vsyncpa [#allocation3 + $0x1], 0  ;;  %s2142_s13 = smov 0   ;;  %s2144_s14 = smov 0  }
   0x2   :  { %s2146_s15 = smov 0   ;;  %s2148_s16 = smov 0  }
   0x3 LB: > { %s2163_s17 = sadd.s32 4294967295, %s2078_s16   ;;  %s1729_s18 = sadd.s32 4294967294, %s2078_s16   ;;  %s2078_s16 = sphi %s2148_s16, %s2408_s16   ;;  %s2074_s15 = sphi %s2146_s15, %s2407_s15   ;;  %s2070_s14 = sphi %s2144_s14, %s2406_s14   ;;  %s2066_s13 = sphi %s2142_s13, %s2405_s13  }
   0x4   : > { %s2167_s19 = sadd.s32 1, %s2078_s16   ;;  %s245_s20 = sadd.s32 1, %s2074_s15 }
   0x5   : > { %s242_s21 = ssub.s32 %s2078_s16, %s2167_s19  ;;  %p255_p0 = scmp.ne.s32.totalorder %s2074_s15, %s2070_s14 }
   0x6   : > { %p243_p1 = scmp.eq.s32.totalorder %s242_s21, 0  ;;  %p256_p2 = scmp.eq.s32.totalorder %s2163_s17, 1 }
   0x7   : > { %p261_p3 = scmp.ne.s32.totalorder %s2070_s14, %s2066_s13  ;;  %p262_p4 = scmp.eq.s32.totalorder %s1729_s18, 1 }
   0x8   : > { %s2178_s22 = scalar_select %p243_p1, %s2074_s15, %s245_s20  }
   0x9   : > { %p2180_p5 = por %p256_p2, %p255_p0  ;;  %p2184_p6 = por %p262_p4, %p261_p3 }
   0xa   : > { %p1732_p7 = scmp.ge.s32.totalorder %s2078_s16, 1  ;;  %p314_p8 = scmp.lt.s32.totalorder %s2078_s16, 3 }
   0xc   : > { %p315_p9 = pnand %p1732_p7, %p314_p8 }
   0xd   : > { %p351_p10 = scmp.lt.s32.totalorder (!%p315_p9), %s2163_s17, 1  ;;  %vm359_vm0 = vcmask (!%p315_p9), 261120   ;;  %v1974_v14 = vld [vmem:[%s2395_s3] sm:$0xff] (!%p315_p9)   ;;  %v1975_v15 = vld [vmem:[%s2395_s3 + $0x10] sm:$0xff] (!%p315_p9)   ;;  %v1976_v34 = vld [vmem:[%s2395_s3 + $0x8] sm:$0xff] (!%p315_p9)   ;;  %v2080_v49 = vmov (!%p315_p9), 0.0  }
   0xe   : > { %318 = sbr.rel (%p315_p9) target bundleno = 2229 (0x8b5), region = 60  ;;  %1806 = vmatprep.mubr.msk.bf16.mxu0 (!%p315_p9), %vm359_vm0, %v1974_v14  ;;  %1810 = vmatprep.mubr.msk.bf16.mxu1 (!%p315_p9), %vm359_vm0, %v1975_v15  ;;  %v357_v27 = vld [vmem:[%s2393_s1] sm:$0xff] (!%p315_p9)  ;;  %v1977_v35 = vld [vmem:[%s2395_s3 + $0x18] sm:$0xff] (!%p315_p9)   ;;  %v1979_v37 = vld [vmem:[%s2395_s3 + $0x28] sm:$0xff] (!%p315_p9)   ;;  %vm2081_vm1 = vmmov (!%p315_p9), 0   ;;  %vm928_vm2 = vcmask (!%p315_p9), 64512  }
   0xf   : > { %v358_v29 = vld [vmem:[%s2394_s2] sm:$0xff] (!%p315_p9)  ;;  %vm1204_vm3 = vcmask (!%p315_p9), 1043456   ;;  %s2082_s21 = smov (!%p315_p9), 8   ;;  %vm1399_vm4 = vcmask (!%p315_p9), 130048   ;;  %vm1401_vm5 = vcmask (!%p315_p9), 195584   ;;  %vm1584_vm7 = vcmask (!%p315_p9), 785408  }
  0x10   : > { %v1978_v36 = vld [vmem:[%s2395_s3 + $0x20] sm:$0xff] (!%p315_p9)   ;;  %s1768_s11 = sshll.u32 (!%p315_p9), %s2163_s17, 7 }
  0x15   : > { %s352_s25 = scalar_select %p351_p10, %s2163_s17, 1 }
  0x16   : > { %s2086_s17 = smov [#allocation2]  }
  0x17   : > { %s1734_s26 = sshll.u32 %s352_s25, 3  ;;  %s2083_s25 = smov 16  }
  0x18   : > { %s354_s29 = scalar_lea.vmem %s2392_s0, %s1734_s26  ;;  %s2084_s26 = smov 24  }
  0x19   : > { %v2195_v0 = vld [vmem:[%s354_s29] sm:$0xff]  ;;  %s348_s29 = sand.u32 1, %s2070_s14   ;;  %s2020_s28 = sshll.u32 %s2086_s17, 4  ;;  %s2021_s28 = int_to_ptr.vmem [resolvable:$false] %s2020_s28 }
  0x1a   : > { %v360_v1 = vsel %vm359_vm0, %v2195_v0, 0.0  ;;  %s1733_s30 = sshll.u32 %s348_s29, 3 }
  0x1b   : > { %361 = vadd.xlane.f32.xlu0 %v360_v1  ;;  %s350_s12 = scalar_lea.vmem [#allocation2], %s1733_s30  ;;  %s2022_s30 = scalar_lea.vmem %s2021_s28, 256 }
  0x1c   : > { %s1670_s18 = sshll.u32 %s350_s12, 4  ;;  %s2351_s18 = int_to_ptr.vmem [resolvable:$true] %s1670_s18 }
  0x1d   : > { %s2016_s27 = scalar_lea.vmem %s2351_s18, 128  ;;  %p2023_p0 = scmp.lt.s32.totalorder %s2351_s18, %s2021_s28 }
  0x1e   : > { %p2017_p11 = scmp.ne.s32.totalorder %s2351_s18, %s2016_s27  ;;  %p2024_p1 = scmp.lt.s32.totalorder %s2022_s30, %s2016_s27 }
  0x20   : > { %p2018_p12 = pnand %p2017_p11, %p2180_p5  ;;  %p2025_p2 = por %p2024_p1, %p2023_p0 }
  0x22   : > { %p2019_p13 = pneg %p2018_p12 }
  0x24   : > { %p2026_p3 = pnand %p2025_p2, %p2019_p13 }
  0xa8   : > { %v362_v2 = vpop.xlane.xlu0 %361 }
  0xa9   : > { %v364_v3 = vmul.f32 0.03125, %v362_v2 }
  0xab   : > { %v365_v4 = vrot.slane %v364_v3, 4 }
  0xad   : > { %v366_v5 = vadd.f32 %v365_v4, %v364_v3 }
  0xaf   : > { %v367_v6 = vrot.slane %v366_v5, 2 }
  0xb1   : > { %v368_v7 = vadd.f32 %v367_v6, %v366_v5 }
  0xb3   : > { %v369_v8 = vrot.slane %v368_v7, 1 }
  0xb5   : > { %v370_v9 = vadd.f32 %v369_v8, %v368_v7 }
  0xb7   : > { %v372_v10 = vmul.f32 0.125, %v370_v9 }
  0xb9   : > { %v373_v11 = vsub.f32 %v2195_v0, %v372_v10 }
  0xbb   : > { %v374_v12 = vmul.f32 %v373_v11, %v373_v11 }
  0xbd   : > { %v375_v13 = vsel %vm359_vm0, %v374_v12, 0.0 }
  0xbe   : > { %376 = vadd.xlane.f32.xlu0 %v375_v13 }
 0x14b   : > { %v377_v16 = vpop.xlane.xlu0 %376 }
 0x14c   : > { %v378_v17 = vmul.f32 0.03125, %v377_v16 }
 0x14e   : > { %v379_v18 = vrot.slane %v378_v17, 4 }
 0x150   : > { %v380_v19 = vadd.f32 %v379_v18, %v378_v17 }
 0x152   : > { %v381_v20 = vrot.slane %v380_v19, 2 }
 0x154   : > { %v382_v21 = vadd.f32 %v381_v20, %v380_v19 }
 0x156   : > { %v383_v22 = vrot.slane %v382_v21, 1 }
 0x158   : > { %v384_v23 = vadd.f32 %v383_v22, %v382_v21 }
 0x15a   : > { %v385_v24 = vmul.f32 0.125, %v384_v23 }
 0x15c   : > { %v386_v25 = vadd.f32 1e-05, %v385_v24 }
 0x15e   : > { %1988 = vrsqrt.f32 %v386_v25 }
 0x168   : > { %v1989_v26 = vpop.eup %1988 }
 0x169   : > { %v388_v28 = vmul.f32 %v1989_v26, %v373_v11 }
 0x16b   : > { %v389_v30 = vmul.f32 %v388_v28, %v357_v27 }
 0x16d   : > { %v390_v31 = vadd.f32 %v389_v30, %v358_v29 }
 0x16f   : > { %v403_v32 = vpack.c.bf16 %v390_v31, %v390_v31 }
 0x171   : > { %1892 = vmatprep.subr.msk.bf16.mxu0 %vm359_vm0, %v403_v32  ;;  %1893 = vmatprep.subr.msk.bf16.mxu1 %vm359_vm0, %v403_v32  ;;  %v453_v33 = vsel %vm359_vm0, %v403_v32, 0 }
 0x172   : > { %1805 = vmatpush3.bf16.xpose.msra.mxu0 %v453_v33  ;;  %1891 = vmatpush3.bf16.xpose.msra.mxu1 %v453_v33 }
 0x173   : > { %1818 = vmatprep.subr.bf16.mxu1 %v2080_v49  ;;  %1836 = vmatprep.subr.bf16.mxu0 %v2080_v49 }
 0x179   : > { %1807 = vmatmul.mubr.msk.bf16.vlgmr.msra.gmra.mrb[0].mxu0 %vm359_vm0, %v1976_v34  ;;  %1811 = vmatmul.mubr.msk.bf16.vlgmr.msra.gmra.mrb[0].mxu1 %vm359_vm0, %v1977_v35 }
 0x17a   : > { %1814 = vmatprep.mubr.msk.bf16.mxu1 %vm359_vm0, %v1978_v36  ;;  %1838 = vmatprep.mubr.msk.bf16.mxu0 %vm2081_vm1, %v2080_v49 }
 0x181   : > { %1815 = vmatmul.mubr.msk.bf16.gmra.mrb[4].mxu1 %vm359_vm0, %v1979_v37 }
 0x182   : > { %1820 = vmatprep.mubr.msk.bf16.mxu1 %vm2081_vm1, %v2080_v49 }
 0x24c   : > { %v1808_v38 = vpop.f32.mrb[0].mxu0  ;;  %v1812_v39 = vpop.f32.mrb[0].mxu1 }
 0x24d   : > { %v489_v40 = vpop.f32.mrb[1].mxu0  ;;  %v505_v41 = vpop.f32.mrb[1].mxu1 }
 0x24e   : > { %664 = vxpose.xlu1.b32.start.end [1/1] (short) (narrow) %v505_v41, 8  ;;  %v1809_v42 = vpop.f32.mrb[2].mxu0  ;;  %v1813_v43 = vpop.f32.mrb[2].mxu1 }
 0x24f   : > { %v1953_v44 = vpack.i.bf16 %v1809_v42, %v1808_v38  ;;  %v492_v45 = vpop.f32.mrb[3].mxu0  ;;  %v508_v46 = vpop.f32.mrb[3].mxu1 }
 0x250   : > { %v1946_v47 = vpack.i.bf16 %v1812_v39, %v492_v45  ;;  %v1939_v48 = vpack.i.bf16 %v508_v46, %v489_v40 }
 0x252   : > { %1940 = vxpose.xlu1.b32.start.end [1/1] (short) (narrow) %v1939_v48, 8  ;;  %1947 = vxpose.xlu0.b32.start.end [1/1] (short) (narrow) %v1946_v47, 8 }
 0x254   : > { %v1816_v50 = vpop.f32.mrb[4].mxu1 }
 0x255   : > { %v521_v51 = vpop.f32.mrb[5].mxu1 }
 0x256   : > { %760 = vxpose.xlu1.b32.start.end [1/1] (short) (narrow) %v1813_v43, 8  ;;  %v1817_v52 = vpop.f32.mrb[6].mxu1 }
 0x257   : > { %v1967_v53 = vpack.i.bf16 %v1817_v52, %v1816_v50  ;;  %v524_v54 = vpop.f32.mrb[7].mxu1 }
 0x258   : > { %v1960_v55 = vpack.i.bf16 %v524_v54, %v521_v51 }
 0x25a   : > { %1954 = vxpose.xlu1.b32.start.end [1/1] (short) (narrow) %v1953_v44, 8 }
 0x25e   : > { %1961 = vxpose.xlu1.b32.start.end [1/1] (short) (narrow) %v1960_v55, 8 }
 0x262   : > { %1968 = vxpose.xlu1.b32.start.end [1/1] (short) (narrow) %v1967_v53, 8 }
 0x2ce   : > { %v680_v56 = vpop.trf.xlu1 }
 0x2cf   : > { %v924_v57 = vpack.c.bf16 %v680_v56, %v680_v56 }
 0x2d1   : > { %v933_v58 = vsel %vm928_vm2, %v924_v57, 0 }
 0x2d2   : > { %1819 = vmatpush3.bf16.xpose.msra.mxu1 %v933_v58  ;;  %v1941_v59 = vpop.trf.xlu1  ;;  %v1948_v60 = vpop.trf.xlu0 }
 0x2d3   : > { %v1945_v61 = vunpack.i.h.bf16 %v1941_v59  ;;  %v1942_v62 = vunpack.i.l.bf16 %v1941_v59  ;;  %1824 = vmatprep.subr.bf16.mxu1 %v2080_v49  ;;  %v1952_v5 = vunpack.i.h.bf16 %v1948_v60  ;;  %v1949_v7 = vunpack.i.l.bf16 %v1948_v60 }
 0x2d5   : > { %v920_v63 = vpack.c.bf16 %v1942_v62, %v1942_v62  ;;  %v925_v1 = vpack.c.bf16 %v1945_v61, %v1945_v61  ;;  %v926_v10 = vpack.c.bf16 %v1952_v5, %v1952_v5  ;;  %v921_v12 = vpack.c.bf16 %v1949_v7, %v1949_v7 }
 0x2d6   : > { %v776_v2 = vpop.trf.xlu1 }
 0x2d7   : > { %v927_v3 = vpack.c.bf16 %v776_v2, %v776_v2  ;;  %v979_v4 = vsel %vm928_vm2, %v925_v1, 0  ;;  %v1025_v13 = vsel %vm928_vm2, %v926_v10, 0 }
 0x2d9   : > { %v1071_v6 = vsel %vm928_vm2, %v927_v3, 0  ;;  %1821 = vmatmul.mubr.msk.bf16.vlgmr.msra.gmra.mrb[8].mxu1 %vm928_vm2, %v920_v63 }
 0x2da   : > { %1825 = vmatpush3.bf16.xpose.msra.mxu1 %v979_v4  ;;  %1837 = vmatpush3.bf16.xpose.msra.mxu0 %v1071_v6  ;;  %v1955_v8 = vpop.trf.xlu1 }
 0x2db   : > { %v1959_v9 = vunpack.i.h.bf16 %v1955_v8  ;;  %1826 = vmatprep.mubr.msk.bf16.mxu1 %vm2081_vm1, %v2080_v49  ;;  %1830 = vmatprep.subr.bf16.mxu1 %v2080_v49  ;;  %v1956_v14 = vunpack.i.l.bf16 %v1955_v8 }
 0x2dc   : > { %1848 = vmatprep.subr.bf16.mxu0 %v2080_v49 }
 0x2dd   : > { %v923_v11 = vpack.c.bf16 %v1959_v9, %v1959_v9  ;;  %v922_v15 = vpack.c.bf16 %v1956_v14, %v1956_v14 }
 0x2de   : > { %v1962_v16 = vpop.trf.xlu1 }
 0x2df   : > { %v1963_v17 = vunpack.i.l.bf16 %v1962_v16  ;;  %v1966_v20 = vunpack.i.h.bf16 %v1962_v16 }
 0x2e1   : > { %1827 = vmatmul.mubr.msk.bf16.vlgmr.msra.gmra.mrb[12].mxu1 %vm928_vm2, %v921_v12  ;;  %1839 = vmatmul.mubr.msk.bf16.vlgmr.msra.gmra.mrb[4].mxu0 %vm928_vm2, %v923_v11  ;;  %v1197_v18 = vpack.c.bf16 %v1963_v17, %v1963_v17  ;;  %v1198_v22 = vpack.c.bf16 %v1966_v20, %v1966_v20 }
 0x2e2   : > { %1831 = vmatpush3.bf16.xpose.msra.mxu1 %v1025_v13  ;;  %1832 = vmatprep.mubr.msk.bf16.mxu1 %vm2081_vm1, %v2080_v49  ;;  %v2262_v21 = vpop.trf.xlu1 }
 0x2e3   : > { %1842 = vmatprep.subr.bf16.mxu1 %v2080_v49  ;;  %1850 = vmatprep.mubr.msk.bf16.mxu0 %vm2081_vm1, %v2080_v49  ;;  %v1206_v19 = vsel %vm1204_vm3, %v1197_v18, 0  ;;  %v1252_v23 = vsel %vm1204_vm3, %v1198_v22, 0 }
 0x2e4   : > { %1849 = vmatpush3.bf16.msra.mxu0 %v1252_v23 }
 0x2e5   : > { %1860 = vmatprep.subr.bf16.mxu0 %v2080_v49 }
 0x2e9   : > { %1833 = vmatmul.mubr.msk.bf16.vlgmr.msra.gmra.mrb[16].mxu1 %vm928_vm2, %v922_v15 }
 0x2ea   : > { %1844 = vmatprep.mubr.msk.bf16.mxu1 %vm2081_vm1, %v2080_v49  ;;  %1843 = vmatpush3.bf16.msra.mxu1 %v1206_v19 }
 0x2eb   : > { %1854 = vmatprep.subr.bf16.mxu1 %v2080_v49 }
 0x3ac   : > { %v969_v24 = vpop.f32.mrb[8].mxu1 }
 0x3ad   : > { %v1113_v25 = vmul.f32 0.35355338, %v969_v24  ;;  %v1822_v26 = vpop.f32.mrb[9].mxu1 }
 0x3ae   : > { %v972_v27 = vpop.f32.mrb[10].mxu1 }
 0x3af   : > { %v1117_v28 = vsel %vm928_vm2, %v1113_v25, -inf  ;;  %v1823_v29 = vpop.f32.mrb[11].mxu1 }
 0x3b0   : > { %v1118_v30 = vrot.slane %v1117_v28, 4 }
 0x3b2   : > { %v1119_v31 = vmax.f32 %v1117_v28, %v1118_v30 }
 0x3b4   : > { %v1120_v32 = vrot.slane %v1119_v31, 2  ;;  %v1015_v33 = vpop.f32.mrb[12].mxu1  ;;  %v1107_v34 = vpop.f32.mrb[4].mxu0 }
 0x3b5   : > { %v1114_v35 = vmul.f32 0.35355338, %v1015_v33  ;;  %v1116_v36 = vmul.f32 0.35355338, %v1107_v34  ;;  %v1828_v37 = vpop.f32.mrb[13].mxu1  ;;  %v1840_v38 = vpop.f32.mrb[5].mxu0 }
 0x3b6   : > { %v1121_v39 = vmax.f32 %v1119_v31, %v1120_v32  ;;  %v1018_v40 = vpop.f32.mrb[14].mxu1  ;;  %v1110_v41 = vpop.f32.mrb[6].mxu0 }
 0x3b7   : > { %v1124_v42 = vsel %vm928_vm2, %v1114_v35, -inf  ;;  %v1138_v43 = vsel %vm928_vm2, %v1116_v36, -inf  ;;  %v1829_v44 = vpop.f32.mrb[15].mxu1  ;;  %v1841_v45 = vpop.f32.mrb[7].mxu0 }
 0x3b8   : > { %v1122_v46 = vrot.slane %v1121_v39, 1  ;;  %v1125_v47 = vrot.slane %v1124_v42, 4  ;;  %v1139_v48 = vrot.slane %v1138_v43, 4  ;;  %v1970_v44 = vunpack.i.l.bf16 %v2262_v21 }
 0x3ba   : > { %v1123_v50 = vmax.f32 %v1121_v39, %v1122_v46  ;;  %v1126_v51 = vmax.f32 %v1124_v42, %v1125_v47  ;;  %v1140_v52 = vmax.f32 %v1138_v43, %v1139_v48 }
 0x3bc   : > { %v1145_v53 = vsub.f32 %v1113_v25, %v1123_v50  ;;  %v1127_v54 = vrot.slane %v1126_v51, 2  ;;  %v1141_v55 = vrot.slane %v1140_v52, 2  ;;  %v1061_v56 = vpop.f32.mrb[16].mxu1  ;;  %v1199_v50 = vpack.c.bf16 %v1970_v44, %v1970_v44 }
 0x3bd   : > { %v1115_v57 = vmul.f32 0.35355338, %v1061_v56  ;;  %v1834_v58 = vpop.f32.mrb[17].mxu1  ;;  %v1973_v56 = vunpack.i.h.bf16 %v2262_v21 }
 0x3be   : > { %v1149_v59 = vmul.f32 1.442695, %v1145_v53  ;;  %v1128_v60 = vmax.f32 %v1126_v51, %v1127_v54  ;;  %v1142_v61 = vmax.f32 %v1140_v52, %v1141_v55  ;;  %v1064_v62 = vpop.f32.mrb[18].mxu1 }
 0x3bf   : > { %v1131_v63 = vsel %vm928_vm2, %v1115_v57, -inf  ;;  %v1835_v1 = vpop.f32.mrb[19].mxu1 }
 0x3c0   : > { %1990 = vpow2.f32 %v1149_v59  ;;  %v1129_v2 = vrot.slane %v1128_v60, 1  ;;  %v1143_v3 = vrot.slane %v1142_v61, 1  ;;  %v1132_v4 = vrot.slane %v1131_v63, 4 }
 0x3c1   : > { %v1200_v59 = vpack.c.bf16 %v1973_v56, %v1973_v56  ;;  %v1404_v56 = vld [vmem:[%s2396_s4] sm:$0xff] }
 0x3c2   : > { %v1130_v5 = vmax.f32 %v1128_v60, %v1129_v2  ;;  %v1144_v6 = vmax.f32 %v1142_v61, %v1143_v3  ;;  %v1133_v7 = vmax.f32 %v1131_v63, %v1132_v4 }
 0x3c3   : > { %v1344_v63 = vsel %vm1204_vm3, %v1200_v59, 0 }
 0x3c4   : > { %v1146_v8 = vsub.f32 %v1114_v35, %v1130_v5  ;;  %v1148_v9 = vsub.f32 %v1116_v36, %v1144_v6  ;;  %v1134_v10 = vrot.slane %v1133_v7, 2 }
 0x3c6   : > { %v1151_v11 = vmul.f32 1.442695, %v1146_v8  ;;  %v1155_v12 = vmul.f32 1.442695, %v1148_v9  ;;  %v1135_v13 = vmax.f32 %v1133_v7, %v1134_v10 }
 0x3c8   : > { %1992 = vpow2.f32 %v1151_v11  ;;  %v1136_v14 = vrot.slane %v1135_v13, 1 }
 0x3c9   : > { %1994 = vpow2.f32 %v1155_v12 }
 0x3ca   : > { %v1991_v15 = vpop.eup %1990  ;;  %v1137_v16 = vmax.f32 %v1135_v13, %v1136_v14 }
 0x3cb   : > { %v1157_v17 = vsel %vm928_vm2, %v1991_v15, 0.0 }
 0x3cc   : > { %v1158_v18 = vrot.slane %v1157_v17, 4  ;;  %v1147_v19 = vsub.f32 %v1115_v57, %v1137_v16  ;;  %v1298_v57 = vsel %vm1204_vm3, %v1199_v50, 0 }
 0x3ce   : > { %v1159_v20 = vadd.f32 %v1158_v18, %v1157_v17  ;;  %v1153_v22 = vmul.f32 1.442695, %v1147_v19 }
 0x3d0   : > { %v1160_v23 = vrot.slane %v1159_v20, 2  ;;  %1996 = vpow2.f32 %v1153_v22 }
 0x3d2   : > { %v1993_v24 = vpop.eup %1992  ;;  %v1161_v25 = vadd.f32 %v1160_v23, %v1159_v20 }
 0x3d3   : > { %v1995_v26 = vpop.eup %1994  ;;  %v1164_v27 = vsel %vm928_vm2, %v1993_v24, 0.0 }
 0x3d4   : > { %v1162_v28 = vrot.slane %v1161_v25, 1  ;;  %v1165_v29 = vrot.slane %v1164_v27, 4  ;;  %v1178_v30 = vsel %vm928_vm2, %v1995_v26, 0.0 }
 0x3d5   : > { %v1179_v31 = vrot.slane %v1178_v30, 4 }
 0x3d6   : > { %v1163_v32 = vadd.f32 %v1162_v28, %v1161_v25  ;;  %v1166_v33 = vadd.f32 %v1165_v29, %v1164_v27 }
 0x3d7   : > { %v1180_v34 = vadd.f32 %v1179_v31, %v1178_v30 }
 0x3d8   : > { %1998 = vrcp.f32 %v1163_v32  ;;  %v1167_v35 = vrot.slane %v1166_v33, 2 }
 0x3d9   : > { %v1181_v36 = vrot.slane %v1180_v34, 2 }
 0x3da   : > { %v1997_v37 = vpop.eup %1996  ;;  %v1168_v38 = vadd.f32 %v1167_v35, %v1166_v33 }
 0x3db   : > { %v1182_v39 = vadd.f32 %v1181_v36, %v1180_v34  ;;  %v1171_v40 = vsel %vm928_vm2, %v1997_v37, 0.0 }
 0x3dc   : > { %v1169_v41 = vrot.slane %v1168_v38, 1  ;;  %v1172_v42 = vrot.slane %v1171_v40, 4 }
 0x3dd   : > { %v1183_v43 = vrot.slane %v1182_v39, 1 }
 0x3de   : > { %v1170_v45 = vadd.f32 %v1169_v41, %v1168_v38  ;;  %v1173_v46 = vadd.f32 %v1172_v42, %v1171_v40 }
 0x3df   : > { %v1184_v47 = vadd.f32 %v1183_v43, %v1182_v39  ;;  %v1981_v43 = vld [vmem:[%s2398_s6 + $0x8] sm:$0xff]  }
 0x3e0   : > { %2000 = vrcp.f32 %v1170_v45  ;;  %v1174_v48 = vrot.slane %v1173_v46, 2 }
 0x3e1   : > { %2002 = vrcp.f32 %v1184_v47 }
 0x3e2   : > { %v1999_v51 = vpop.eup %1998  ;;  %v1175_v52 = vadd.f32 %v1174_v48, %v1173_v46 }
 0x3e3   : > { %v1189_v53 = vmul.f32 %v1999_v51, %v1991_v15 }
 0x3e4   : > { %v1176_v54 = vrot.slane %v1175_v52, 1 }
 0x3e5   : > { %v1193_v55 = vpack.c.bf16 %v1189_v53, %v1189_v53 }
 0x3e6   : > { %v1177_v58 = vadd.f32 %v1176_v54, %v1175_v52 }
 0x3e7   : > { %1845 = vmatmul.mubr.msk.bf16.vlgmr.msra.gmra.mrb[20].mxu1 %vm928_vm2, %v1193_v55 }
 0x3e8   : > { %2004 = vrcp.f32 %v1177_v58  ;;  %1855 = vmatpush3.bf16.msra.mxu1 %v1298_v57  ;;  %1856 = vmatprep.mubr.msk.bf16.mxu1 %vm2081_vm1, %v2080_v49  ;;  %v1405_v58 = vld [vmem:[%s2397_s5] sm:$0xff] }
 0x3e9   : > { %1866 = vmatprep.subr.bf16.mxu1 %v2080_v49 }
 0x3ea   : > { %v2001_v60 = vpop.eup %2000 }
 0x3eb   : > { %v1190_v61 = vmul.f32 %v2001_v60, %v1993_v24  ;;  %v2003_v1 = vpop.eup %2002 }
 0x3ec   : > { %v1192_v21 = vmul.f32 %v2003_v1, %v1995_v26  ;;  %v1984_v1 = vld [vmem:[%s2400_s8 + $0x10] sm:$0xff]  }
 0x3ed   : > { %v1194_v62 = vpack.c.bf16 %v1190_v61, %v1190_v61 }
 0x3ee   : > { %v1196_v5 = vpack.c.bf16 %v1192_v21, %v1192_v21  ;;  %v1985_v21 = vld [vmem:[%s2400_s8 + $0x18] sm:$0xff]  }
 0x3ef   : > { %1851 = vmatmul.mubr.msk.bf16.vlgmr.msra.gmra.mrb[8].mxu0 %vm928_vm2, %v1194_v62  ;;  %v1982_v62 = vld [vmem:[%s2400_s8] sm:$0xff]  }
 0x3f0   : > { %1861 = vmatpush3.bf16.msra.mxu0 %v1344_v63  ;;  %1862 = vmatprep.mubr.msk.bf16.mxu0 %vm2081_vm1, %v2080_v49  ;;  %v1983_v63 = vld [vmem:[%s2400_s8 + $0x8] sm:$0xff]  }
 0x3f1   : > { %1874 = vmatprep.subr.bf16.mxu0 %v2080_v49 }
 0x3f2   : > { %v2005_v2 = vpop.eup %2004 }
 0x3f3   : > { %v1191_v3 = vmul.f32 %v2005_v2, %v1997_v37  ;;  %v1986_v2 = vld [vmem:[%s2400_s8 + $0x20] sm:$0xff]  }
 0x3f5   : > { %v1195_v4 = vpack.c.bf16 %v1191_v3, %v1191_v3  ;;  %v1987_v3 = vld [vmem:[%s2400_s8 + $0x28] sm:$0xff]  }
 0x3f7   : > { %1857 = vmatmul.mubr.msk.bf16.vlgmr.msra.gmra.mrb[24].mxu1 %vm928_vm2, %v1195_v4  ;;  %1863 = vmatmul.mubr.msk.bf16.vlgmr.msra.gmra.mrb[12].mxu0 %vm928_vm2, %v1196_v5  ;;  %v1755_v4 = vld [vmem:[%s2399_s7] ss:$0 sm:$0xff] }
 0x3f8   : > { %1870 = vmatprep.mubr.msk.bf16.mxu1 %vm2081_vm1, %v2080_v49  ;;  %1886 = vmatprep.mubr.msk.bf16.mxu0 %vm2081_vm1, %v2080_v49 }
 0x3f9   : > { %1875 = vmatpush3.bf16.msra.mxu0 %v1982_v62 }
 0x3fa   : > { %1876 = vmatprep.subr.bf16.mxu0 %v2080_v49 }
 0x3fd   : > { %1877 = vmatpush3.bf16.msra.mxu0 %v1983_v63 }
 0x3fe   : > { %1878 = vmatprep.subr.bf16.mxu0 %v2080_v49 }
 0x401   : > { %1879 = vmatpush3.bf16.msra.mxu0 %v1984_v1 }
 0x402   : > { %1880 = vmatprep.subr.bf16.mxu0 %v2080_v49 }
 0x405   : > { %1881 = vmatpush3.bf16.msra.mxu0 %v1985_v21 }
 0x406   : > { %1882 = vmatprep.subr.bf16.mxu0 %v2080_v49 }
 0x409   : > { %1883 = vmatpush3.bf16.msra.mxu0 %v1986_v2 }
 0x40a   : > { %1884 = vmatprep.subr.bf16.mxu0 %v2080_v49 }
 0x40d   : > { %1885 = vmatpush3.bf16.msra.mxu0 %v1987_v3 }
 0x4ba   : > { %v1242_v6 = vpop.f32.mrb[20].mxu1 }
 0x4bb   : > { %v1846_v7 = vpop.f32.mrb[21].mxu1 }
 0x4bc   : > { %v1245_v8 = vpop.f32.mrb[22].mxu1 }
 0x4bd   : > { %v1847_v9 = vpop.f32.mrb[23].mxu1 }
 0x4c2   : > { %v1288_v10 = vpop.f32.mrb[8].mxu0 }
 0x4c3   : > { %1387 = vrot.lane.b32.xlu1 %v1288_v10, %s2082_s21  ;;  %v1852_v11 = vpop.f32.mrb[9].mxu0 }
 0x4c4   : > { %v1291_v12 = vpop.f32.mrb[10].mxu0 }
 0x4c5   : > { %v1853_v13 = vpop.f32.mrb[11].mxu0 }
 0x4ca   : > { %v1334_v14 = vpop.f32.mrb[24].mxu1  ;;  %v1380_v15 = vpop.f32.mrb[12].mxu0 }
 0x4cb   : > { %1391 = vrot.lane.b32.xlu0 %v1334_v14, %s2083_s25  ;;  %v1858_v16 = vpop.f32.mrb[25].mxu1  ;;  %1395 = vrot.lane.b32.xlu1 %v1380_v15, %s2084_s26  ;;  %v1864_v17 = vpop.f32.mrb[13].mxu0  ;;  %s2349_s25 = scalar_lea.hbm %s2402_s10, %s1768_s11  ;;  %s1657_s26 = scalar_lea.sflag [#allocation3], %s348_s29 }
 0x4cc   : > { %v1337_v18 = vpop.f32.mrb[26].mxu1  ;;  %v1383_v19 = vpop.f32.mrb[14].mxu0 }
 0x4cd   : > { %v1859_v20 = vpop.f32.mrb[27].mxu1  ;;  %v1865_v22 = vpop.f32.mrb[15].mxu0 }
 0x535   : > { %v1388_v23 = vpop.permute.xlu1 %1387 }
 0x536   : > { %v1398_v24 = vsel %vm928_vm2, %v1242_v6, %v1388_v23 }
 0x53d   : > { %v1392_v25 = vpop.permute.xlu0 %1391  ;;  %v1396_v26 = vpop.permute.xlu1 %1395 }
 0x53e   : > { %v1400_v27 = vsel %vm1399_vm4, %v1398_v24, %v1392_v25 }
 0x53f   : > { %v1402_v28 = vsel %vm1401_vm5, %v1400_v27, %v1396_v26 }
 0x540   : > { %v2294_v29 = vadd.f32 %v1402_v28, %v2195_v0  ;;  %v1980_v0 = vld [vmem:[%s2398_s6] sm:$0xff]  }
 0x541   : > { %1867 = vmatpush3.bf16.msra.mxu1 %v1980_v0 }
 0x542   : > { %v1406_v30 = vsel %vm359_vm0, %v2294_v29, 0.0  ;;  %1868 = vmatprep.subr.bf16.mxu1 %v2080_v49 }
 0x543   : > { %1407 = vadd.xlane.f32.xlu1 %v1406_v30 }
 0x545   : > { %1869 = vmatpush3.bf16.msra.mxu1 %v1981_v43 }
 0x5d0   : > { %v1408_v31 = vpop.xlane.xlu1 %1407 }
 0x5d1   : > { %v1409_v32 = vmul.f32 0.03125, %v1408_v31  ;;  %v2085_v31 = vmov -1.0  }
 0x5d3   : > { %v1410_v33 = vrot.slane %v1409_v32, 4 }
 0x5d5   : > { %v1411_v34 = vadd.f32 %v1410_v33, %v1409_v32 }
 0x5d7   : > { %v1412_v35 = vrot.slane %v1411_v34, 2 }
 0x5d9   : > { %v1413_v36 = vadd.f32 %v1412_v35, %v1411_v34 }
 0x5db   : > { %v1414_v37 = vrot.slane %v1413_v36, 1 }
 0x5dd   : > { %v1415_v38 = vadd.f32 %v1414_v37, %v1413_v36 }
 0x5df   : > { %v1416_v39 = vmul.f32 0.125, %v1415_v38  ;;  %v1759_v38 = vld [vmem:[%s2401_s9] ss:$0 sm:$0xff] }
 0x5e1   : > { %v1417_v40 = vsub.f32 %v2294_v29, %v1416_v39 }
 0x5e3   : > { %v1418_v41 = vmul.f32 %v1417_v40, %v1417_v40 }
 0x5e5   : > { %v1419_v42 = vsel %vm359_vm0, %v1418_v41, 0.0 }
 0x5e6   : > { %1420 = vadd.xlane.f32.xlu0 %v1419_v42 }
 0x673   : > { %v1421_v44 = vpop.xlane.xlu0 %1420 }
 0x674   : > { %v1422_v45 = vmul.f32 0.03125, %v1421_v44 }
 0x676   : > { %v1423_v46 = vrot.slane %v1422_v45, 4 }
 0x678   : > { %v1424_v47 = vadd.f32 %v1423_v46, %v1422_v45 }
 0x67a   : > { %v1425_v48 = vrot.slane %v1424_v47, 2 }
 0x67c   : > { %v1426_v50 = vadd.f32 %v1425_v48, %v1424_v47 }
 0x67e   : > { %v1427_v51 = vrot.slane %v1426_v50, 1 }
 0x680   : > { %v1428_v52 = vadd.f32 %v1427_v51, %v1426_v50 }
 0x682   : > { %v1429_v53 = vmul.f32 0.125, %v1428_v52 }
 0x684   : > { %v1430_v54 = vadd.f32 1e-05, %v1429_v53 }
 0x686   : > { %2006 = vrsqrt.f32 %v1430_v54 }
 0x690   : > { %v2007_v55 = vpop.eup %2006 }
 0x691   : > { %v1432_v57 = vmul.f32 %v2007_v55, %v1417_v40 }
 0x693   : > { %v1433_v59 = vmul.f32 %v1432_v57, %v1404_v56 }
 0x695   : > { %v1434_v60 = vadd.f32 %v1433_v59, %v1405_v58 }
 0x697   : > { %v1435_v61 = vpack.c.bf16 %v1434_v60, %v1434_v60 }
 0x699   : > { %1871 = vmatmul.mubr.msk.bf16.vlgmr.msra.gmra.mrb[28].mxu1 %vm359_vm0, %v1435_v61 }
 0x76c   : > { %v1496_v5 = vpop.f32.mrb[28].mxu1 }
 0x76d   : > { %v1497_v6 = vadd.f32 %v1755_v4, %v1496_v5  ;;  %v1872_v7 = vpop.f32.mrb[29].mxu1 }
 0x76e   : > { %v1499_v8 = vpop.f32.mrb[30].mxu1 }
 0x76f   : > { %v1503_v9 = vmul.f32 0.70710677, %v1497_v6  ;;  %v1873_v10 = vpop.f32.mrb[31].mxu1  ;;  %v1502_v34 = vmul.f32 0.5, %v1497_v6 }
 0x771   : > { %v1506_v11 = vand.u32 2147483647, %v1503_v9  ;;  %vm1504_vm6 = vcmp.ge.f32.partialorder %v1503_v9, 0.0 }
 0x772   : > { %v1505_v32 = vsel %vm1504_vm6, 1.0, %v2085_v31 }
 0x773   : > { %v1507_v12 = vmul.f32 0.3275911, %v1506_v11  ;;  %v1519_v49 = vsub.f32 0.0, %v1506_v11 }
 0x775   : > { %v1508_v13 = vadd.f32 1.0, %v1507_v12  ;;  %v1520_v15 = vmul.f32 %v1519_v49, %v1506_v11 }
 0x777   : > { %2008 = vrcp.f32 %v1508_v13  ;;  %v1521_v18 = vmul.f32 1.442695, %v1520_v15 }
 0x779   : > { %2010 = vpow2.f32 %v1521_v18 }
 0x781   : > { %v2009_v14 = vpop.eup %2008 }
 0x782   : > { %v1510_v16 = vmul.f32 1.0614054, %v2009_v14 }
 0x783   : > { %v2011_v27 = vpop.eup %2010 }
 0x784   : > { %v1511_v17 = vadd.f32 -1.4531521, %v1510_v16 }
 0x786   : > { %v1512_v19 = vmul.f32 %v2009_v14, %v1511_v17 }
 0x788   : > { %v1513_v20 = vadd.f32 1.4214138, %v1512_v19 }
 0x78a   : > { %v1514_v22 = vmul.f32 %v2009_v14, %v1513_v20 }
 0x78c   : > { %v1515_v23 = vadd.f32 -0.28449672, %v1514_v22 }
 0x78e   : > { %v1516_v24 = vmul.f32 %v2009_v14, %v1515_v23 }
 0x790   : > { %v1517_v25 = vadd.f32 0.2548296, %v1516_v24 }
 0x792   : > { %v1518_v26 = vmul.f32 %v2009_v14, %v1517_v25 }
 0x794   : > { %v1523_v28 = vmul.f32 %v2011_v27, %v1518_v26 }
 0x796   : > { %v1524_v30 = vsub.f32 1.0, %v1523_v28 }
 0x798   : > { %v1525_v33 = vmul.f32 %v1524_v30, %v1505_v32 }
 0x79a   : > { %v1526_v35 = vadd.f32 1.0, %v1525_v33 }
 0x79c   : > { %v1527_v36 = vmul.f32 %v1526_v35, %v1502_v34 }
 0x79e   : > { %v1528_v37 = vpack.c.bf16 %v1527_v36, %v1527_v36 }
 0x7a0   : > { %1887 = vmatmul.mubr.msk.bf16.vlgmr.msra.gmra.mrb[16].mxu0 %vm1584_vm7, %v1528_v37 }
 0x873   : > { %v1622_v39 = vpop.f32.mrb[16].mxu0 }
 0x874   : > { %v1623_v40 = vadd.f32 %v1759_v38, %v1622_v39  ;;  %v1888_v41 = vpop.f32.mrb[17].mxu0 }
 0x875   : > { %v1625_v42 = vpop.f32.mrb[18].mxu0 }
 0x876   : > { %v1629_v0 = vmul.f32 0.70710677, %v1623_v40  ;;  %v1889_v43 = vpop.f32.mrb[19].mxu0  ;;  %v1628_v2 = vmul.f32 0.5, %v1623_v40 }
 0x878   : > { %v1632_v44 = vand.u32 2147483647, %v1629_v0  ;;  %vm1630_vm8 = vcmp.ge.f32.partialorder %v1629_v0, 0.0 }
 0x879   : > { %v1631_v1 = vsel %vm1630_vm8, 1.0, %v2085_v31 }
 0x87a   : > { %v1633_v45 = vmul.f32 0.3275911, %v1632_v44  ;;  %v1645_v47 = vsub.f32 0.0, %v1632_v44 }
 0x87c   : > { %v1634_v46 = vadd.f32 1.0, %v1633_v45  ;;  %v1646_v50 = vmul.f32 %v1645_v47, %v1632_v44 }
 0x87e   : > { %2012 = vrcp.f32 %v1634_v46  ;;  %v1647_v53 = vmul.f32 1.442695, %v1646_v50 }
 0x880   : > { %2014 = vpow2.f32 %v1647_v53 }
 0x888   : > { %v2013_v48 = vpop.eup %2012 }
 0x889   : > { %v1636_v51 = vmul.f32 1.0614054, %v2013_v48 }
 0x88a   : > { %v2015_v61 = vpop.eup %2014 }
 0x88b   : > { %v1637_v52 = vadd.f32 -1.4531521, %v1636_v51 }
 0x88d   : > { %v1638_v54 = vmul.f32 %v2013_v48, %v1637_v52 }
 0x88f   : > { %v1639_v55 = vadd.f32 1.4214138, %v1638_v54 }
 0x891   : > { %v1640_v56 = vmul.f32 %v2013_v48, %v1639_v55 }
 0x893   : > { %v1641_v57 = vadd.f32 -0.28449672, %v1640_v56 }
 0x895   : > { %v1642_v58 = vmul.f32 %v2013_v48, %v1641_v57 }
 0x897   : > { %v1643_v59 = vadd.f32 0.2548296, %v1642_v58 }
 0x899   : > { %v1644_v60 = vmul.f32 %v2013_v48, %v1643_v59 }
 0x89b   : > { %v1649_v62 = vmul.f32 %v2015_v61, %v1644_v60 }
 0x89d   : > { %v1650_v63 = vsub.f32 1.0, %v1649_v62 }
 0x89f   : > { %v1651_v21 = vmul.f32 %v1650_v63, %v1631_v1 }
 0x8a1   : > { %v1652_v3 = vadd.f32 1.0, %v1651_v21 }
 0x8a3   : > { %v1653_v4 = vmul.f32 %v1652_v3, %v1628_v2 }
 0x8a5   : > { %v1654_v5 = vadd.f32 %v1653_v4, %v2294_v29 }
 0x8a7   : > { %1655 = vst.msk [vmem:[%s350_s12] sm:$0xff] %vm359_vm0, %v1654_v5 }
 0x8a8   : > { %2029 = shalt.err (!%p2026_p3)
}
 0x8a9   : > { %s2030_s29 = scalar_lea.hbm %s2349_s25, 128  ;;  %s2034_s20 = scalar_lea.hbm %s2402_s10, 256 }
 0x8aa   : > { %p2031_p4 = scmp.ne.s32.totalorder %s2349_s25, %s2030_s29  ;;  %p2035_p9 = scmp.lt.u32.totalorder %s2349_s25, %s2402_s10 }
 0x8ab   : > { %p2036_p10 = scmp.lt.u32.totalorder %s2034_s20, %s2030_s29  ;;  %p2038_p12 = scmp.lt.u32.totalorder %s2030_s29, %s2349_s25 }
 0x8ac   : > { %p2032_p7 = pnand %p2031_p4, %p2180_p5 }
 0x8ad   : > { %p2037_p11 = por %p2036_p10, %p2035_p9 }
 0x8ae   : > { %p2033_p8 = pneg %p2032_p7 }
 0x8af   : > { %p2039_p13 = por %p2038_p12, %p2037_p11 }
 0x8b1   : > { %p2040_p0 = pnand %p2039_p13, %p2033_p8 }
 0x8b3   : > { %2043 = shalt.err (!%p2040_p0)
}
 0x8b4   : > { %1894 = dma.vmem_to_hbm [thread:$0]  (%p2180_p5), %s2351_s18, 128, %s2349_s25, %s1657_s26  }
 0x8b5 PF: > { %p1900_p1 = scmp.ge.s32.totalorder %s2078_s16, 2  ;;  %s1682_s27 = sand.u32 1, %s2066_s13  }
 0x8b6   : > { %s1683_s28 = scalar_lea.sflag [#allocation3], %s1682_s27 }
 0x8b7   : > { %p1897_p2 = pnand %p1900_p1, %p2184_p6 }
 0x8b9   : > { %2061 = dma.done.wait (!%p1897_p2), %s1683_s28, 128  }
 0x8ba   : > { %2063 = vsyncadd (!%p1897_p2), %s1683_s28, 4294967168  ;;  %p20_p3 = scmp.ge.s32.totalorder %s2167_s19, 4   ;;  %s2405_s13 = smov %s2070_s14 }
 0x8bb   : > { %s2406_s14 = smov %s2074_s15  ;;  %s2407_s15 = smov %s2178_s22 }
 0x8bc   : > { %s2408_s16 = smov %s2167_s19  ;;  %22 = sbr.rel (!%p20_p3) target bundleno = 3 (0x3), region = 95 }
 0x8c3   :  { %1688 = vsyncpa [#allocation3], 1 }
 0x8c4   :  { %1690 = vsyncpa [#allocation3 + $0x1], 1 }

</bundles_post_ra>
